<compile_context>
chip_gen: v6e
topology: v6e:2x2x1
jax: 0.10.0
libtpu: 0.0.40
codegen_flags: <defaults>
</compile_context>

<pallas_src>
import functools
import math

import jax
import jax.numpy as jnp
from jax.experimental import pallas as pl
from jax.experimental.pallas import tpu as pltpu


# ----------------------------------------------------------------------------
# Fused encoder-layer kernel
# ----------------------------------------------------------------------------
def _ln(x, g, b, eps):
    """LayerNorm over the last axis. x:(T,D) f32, g/b:(1,D) f32."""
    mean = jnp.mean(x, axis=-1, keepdims=True)
    c = x - mean
    var = jnp.mean(c * c, axis=-1, keepdims=True)
    return c * jax.lax.rsqrt(var + eps) * g + b


def _layer_kernel(x_ref,
                  wqkv_ref, bqkv_ref,
                  wo_ref, bo_ref,
                  w1_ref, b1_ref,
                  w2_ref, b2_ref,
                  ln1g_ref, ln1b_ref,
                  ln2g_ref, ln2b_ref,
                  sng_ref, snb_ref,
                  o_ref,
                  ctx_ref,
                  *, nhead, d_model, d_ff, ffn_chunk, eps, norm_eps, scale,
                  apply_stream_norm):
    bt, S, D = x_ref.shape
    dh = d_model // nhead
    T = bt * S

    # Residual stream kept in f32; matmul operands cast to bf16 (MXU native).
    x = x_ref[...].astype(jnp.float32).reshape(T, D)
    x_bf = x.astype(jnp.bfloat16)

    # --- fused QKV projection: bf16 x bf16 -> f32 accumulate ---
    qkv = jnp.dot(x_bf, wqkv_ref[...], preferred_element_type=jnp.float32)
    qkv = qkv + bqkv_ref[...]                                  # (T, 3D) f32
    q = (qkv[:, 0 * D:1 * D] * scale).reshape(bt, S, D)        # scale folded in
    k = qkv[:, 1 * D:2 * D].reshape(bt, S, D)
    v = qkv[:, 2 * D:3 * D].reshape(bt, S, D)

    # --- per-head attention; contexts land at static lane offsets in a VMEM
    #     scratch so the output projection is ONE full-D matmul afterwards. ---
    for h in range(nhead):
        lo = h * dh
        qh = q[:, :, lo:lo + dh].astype(jnp.bfloat16)          # (bt, S, dh)
        kh = k[:, :, lo:lo + dh].astype(jnp.bfloat16)
        vh = v[:, :, lo:lo + dh].astype(jnp.bfloat16)
        s = jnp.einsum('bqd,bkd->bqk', qh, kh,
                       preferred_element_type=jnp.float32)     # (bt, S, S)
        s = s - jnp.max(s, axis=-1, keepdims=True)
        p = jnp.exp(s)
        p = p * pl.reciprocal(jnp.sum(p, axis=-1, keepdims=True), approx=True)
        ctx = jnp.einsum('bqk,bkd->bqd', p.astype(jnp.bfloat16), vh,
                         preferred_element_type=jnp.float32)   # (bt, S, dh)
        ctx_ref[:, lo:lo + dh] = ctx.reshape(T, dh).astype(jnp.bfloat16)

    # --- single full-contraction output projection ---
    attn = jnp.dot(ctx_ref[...], wo_ref[...],
                   preferred_element_type=jnp.float32) + bo_ref[...]

    # --- residual + norm1 ---
    h1 = _ln(x + attn, ln1g_ref[...], ln1b_ref[...], eps)
    h1_bf = h1.astype(jnp.bfloat16)

    # --- feed-forward (ReLU), hidden dim processed in static chunks ---
    acc = jnp.zeros((T, D), jnp.float32)
    for fc in range(0, d_ff, ffn_chunk):
        hi = min(fc + ffn_chunk, d_ff)
        a = jnp.dot(h1_bf, w1_ref[:, fc:hi],
                    preferred_element_type=jnp.float32) + b1_ref[:, fc:hi]
        a = jnp.maximum(a, 0.0).astype(jnp.bfloat16)
        acc = acc + jnp.dot(a, w2_ref[fc:hi, :],
                            preferred_element_type=jnp.float32)
    ffn = acc + b2_ref[...]

    # --- residual + norm2 ---
    h2 = _ln(h1 + ffn, ln2g_ref[...], ln2b_ref[...], eps)

    # --- multi-stream LayerNorm (applied after every layer, as in PyTorch) ---
    if apply_stream_norm:
        h2 = _ln(h2, sng_ref[...], snb_ref[...], norm_eps)

    o_ref[...] = h2.reshape(bt, S, D).astype(o_ref.dtype)


def fused_encoder_layer(x, p, stream_norm, nhead, eps, norm_eps,
                        apply_stream_norm, *, block_batch=None, ffn_chunk=None):
    """x: (B, S, D) -> (B, S, D). One pallas_call for the whole layer."""
    B, S, D = x.shape
    F = p["lin1_w"].shape[1]
    dh = D // nhead
    scale = 1.0 / math.sqrt(dh)

    # Batch tile: largest divisor of B keeping the per-step token block ~2 MiB.
    if block_batch is None:
        cap = max(1, (2 << 20) // max(1, S * D * x.dtype.itemsize))
        block_batch = 1
        for d in range(1, B + 1):
            if B % d == 0 and d <= cap:
                block_batch = d
    bt = block_batch
    assert B % bt == 0, "block_batch must divide B"

    if ffn_chunk is None:
        ffn_chunk = F if F <= 2048 else 1024

    kernel = functools.partial(
        _layer_kernel, nhead=nhead, d_model=D, d_ff=F, ffn_chunk=ffn_chunk,
        eps=eps, norm_eps=norm_eps, scale=scale,
        apply_stream_norm=apply_stream_norm)

    # Constant operands: whole-array VMEM residency (no per-step re-DMA /
    # double buffering of weights across grid steps).
    vmem_const = pl.BlockSpec(memory_space=pltpu.MemorySpace.VMEM)

    operands = (
        x,
        p["in_proj_w"], p["in_proj_b"].reshape(1, -1).astype(jnp.float32),
        p["out_proj_w"], p["out_proj_b"].reshape(1, -1).astype(jnp.float32),
        p["lin1_w"], p["lin1_b"].reshape(1, -1).astype(jnp.float32),
        p["lin2_w"], p["lin2_b"].reshape(1, -1).astype(jnp.float32),
        p["ln1_g"].reshape(1, -1).astype(jnp.float32),
        p["ln1_b"].reshape(1, -1).astype(jnp.float32),
        p["ln2_g"].reshape(1, -1).astype(jnp.float32),
        p["ln2_b"].reshape(1, -1).astype(jnp.float32),
        stream_norm["g"].reshape(1, -1).astype(jnp.float32),
        stream_norm["b"].reshape(1, -1).astype(jnp.float32),
    )

    # Explicit scoped-VMEM budget: params (single copy) + pipelined activation
    # blocks + in-kernel intermediates, with headroom.
    param_bytes = sum(int(a.size) * a.dtype.itemsize for a in operands[1:])
    tok = bt * S
    act_bytes = 4 * bt * S * D * x.dtype.itemsize               # in+out, 2x buf
    inter_bytes = (4 * tok * (3 * D + 4 * D + ffn_chunk)
                   + 8 * bt * S * S + 2 * tok * D)
    vmem_limit = int(min(100 << 20,
                         max(32 << 20,
                             param_bytes + act_bytes + inter_bytes + (4 << 20))))

    flops = (2 * B * S * D * 3 * D          # qkv proj
             + 4 * B * nhead * S * S * dh   # scores + context
             + 2 * B * S * D * D            # out proj
             + 4 * B * S * D * F)           # ffn
    cost = pl.CostEstimate(
        flops=flops,
        transcendentals=B * nhead * S * S + 3 * B * S,
        bytes_accessed=2 * B * S * D * x.dtype.itemsize + param_bytes)

    return pl.pallas_call(
        kernel,
        out_shape=jax.ShapeDtypeStruct((B, S, D), x.dtype),
        grid=(B // bt,),
        in_specs=[pl.BlockSpec((bt, S, D), lambda b: (b, 0, 0))]
                 + [vmem_const] * (len(operands) - 1),
        out_specs=pl.BlockSpec((bt, S, D), lambda b: (b, 0, 0)),
        scratch_shapes=[pltpu.VMEM((bt * S, D), jnp.bfloat16)],
        compiler_params=pltpu.CompilerParams(
            dimension_semantics=("parallel",),
            vmem_limit_bytes=vmem_limit),
        cost_estimate=cost,
    )(*operands)


# ----------------------------------------------------------------------------
# Multi-stream encoder forward (PyTorch-equivalent glue)
# ----------------------------------------------------------------------------
def multi_stream_encoder_forward(src, layer_params, norms, nhead,
                                 layer_eps=1e-5, norm_eps=1e-5,
                                 use_norm=True, modality=None):
    """Equivalent of Multi_Stream_TransformerEncoder.forward (mask=None).

    src: (S, B, D) seq-first, like PyTorch.
    """
    S, B, D = src.shape

    # Select the stream norm once (static, mirrors the PyTorch branches).
    stream_norm = None
    if use_norm:
        if modality is None:
            stream_norm = norms["norm"]
        elif modality == "e":
            stream_norm = norms["norm_e"]
        elif modality == "t":
            stream_norm = norms["norm_t"]
    apply_stream = stream_norm is not None
    if stream_norm is None:  # dummy params, statically skipped inside the kernel
        stream_norm = {"g": jnp.ones((D,), jnp.float32),
                       "b": jnp.zeros((D,), jnp.float32)}

    # Batch-first internally: one transpose for the whole stack, not per layer.
    # TODO(synk): accept batch-first input at the API to drop both transposes.
    x = jnp.transpose(src, (1, 0, 2))  # (B, S, D)
    for p in layer_params:
        x = fused_encoder_layer(x, p, stream_norm, nhead,
                                layer_eps, norm_eps, apply_stream)
    return jnp.transpose(x, (1, 0, 2))  # back to (S, B, D)


# ----------------------------------------------------------------------------
# Deterministic synthetic parameter init (weights bf16, biases/LN f32)
# ----------------------------------------------------------------------------
def init_params(key, d_model, nhead, dff, num_layers):
    keys = jax.random.split(key, 4)

    def make_layer():
        # weights stored as (Din, Dout), bf16 for native MXU rate
        return {
            "in_proj_w": (0.05 * jax.random.normal(
                keys[0], (d_model, 3 * d_model), jnp.float32)).astype(jnp.bfloat16),
            "in_proj_b": jnp.zeros((3 * d_model,), jnp.float32),
            "out_proj_w": (0.05 * jax.random.normal(
                keys[1], (d_model, d_model), jnp.float32)).astype(jnp.bfloat16),
            "out_proj_b": jnp.zeros((d_model,), jnp.float32),
            "lin1_w": (0.05 * jax.random.normal(
                keys[2], (d_model, dff), jnp.float32)).astype(jnp.bfloat16),
            "lin1_b": jnp.zeros((dff,), jnp.float32),
            "lin2_w": (0.05 * jax.random.normal(
                keys[3], (dff, d_model), jnp.float32)).astype(jnp.bfloat16),
            "lin2_b": jnp.zeros((d_model,), jnp.float32),
            "ln1_g": jnp.ones((d_model,), jnp.float32),
            "ln1_b": jnp.zeros((d_model,), jnp.float32),
            "ln2_g": jnp.ones((d_model,), jnp.float32),
            "ln2_b": jnp.zeros((d_model,), jnp.float32),
        }

    # _get_clones = deepcopy -> identical initial values, independent params.
    layer_params = [make_layer() for _ in range(num_layers)]
    norms = {
        name: {"g": jnp.ones((d_model,), jnp.float32),
               "b": jnp.zeros((d_model,), jnp.float32)}
        for name in ("norm", "norm_e", "norm_t")
    }
    return layer_params, norms


if __name__ == "__main__":
    # Small shapes consistent with the module's (S, B, d_model) convention.
    S, B, D = 8, 2, 32
    NHEAD, DFF, NUM_LAYERS = 4, 64, 2

    key = jax.random.PRNGKey(0)
    k_src, k_par = jax.random.split(key)
    src = jax.random.normal(k_src, (S, B, D), jnp.float32)

    layer_params, norms = init_params(k_par, D, NHEAD, DFF, NUM_LAYERS)

    fwd = jax.jit(functools.partial(multi_stream_encoder_forward,
                                    nhead=NHEAD, modality=None))
    out = fwd(src, layer_params, norms)
    out = jax.block_until_ready(out)

    assert out.shape == (S, B, D)
    assert bool(jnp.all(jnp.isfinite(out)))
    print("KERNEL_OK")
</pallas_src>

<mosaic_0001>
module attributes {stable_mosaic.version = 11 : i64} {
  func.func @_layer_kernel(%arg0: i32, %arg1: memref<2x8x32xf32, #tpu.memory_space<vmem>>, %arg2: memref<32x96xbf16, #tpu.memory_space<vmem>>, %arg3: memref<1x96xf32, #tpu.memory_space<vmem>>, %arg4: memref<32x32xbf16, #tpu.memory_space<vmem>>, %arg5: memref<1x32xf32, #tpu.memory_space<vmem>>, %arg6: memref<32x64xbf16, #tpu.memory_space<vmem>>, %arg7: memref<1x64xf32, #tpu.memory_space<vmem>>, %arg8: memref<64x32xbf16, #tpu.memory_space<vmem>>, %arg9: memref<1x32xf32, #tpu.memory_space<vmem>>, %arg10: memref<1x32xf32, #tpu.memory_space<vmem>>, %arg11: memref<1x32xf32, #tpu.memory_space<vmem>>, %arg12: memref<1x32xf32, #tpu.memory_space<vmem>>, %arg13: memref<1x32xf32, #tpu.memory_space<vmem>>, %arg14: memref<1x32xf32, #tpu.memory_space<vmem>>, %arg15: memref<1x32xf32, #tpu.memory_space<vmem>>, %arg16: memref<2x8x32xf32, #tpu.memory_space<vmem>>, %arg17: memref<16x32xbf16, #tpu.memory_space<vmem>>) attributes {dimension_semantics = [#tpu.dimension_semantics<parallel>], iteration_bounds = array<i64: 1>, scalar_prefetch = 0 : i64, scratch_operands = 1 : i64, tpu.core_type = #tpu.core_type<tc>, window_params = [{transform_indices = @transform_0, window_bounds = array<i64: 2, 8, 32>}, {pipeline_mode = #tpu.pipeline_mode<synchronous>, transform_indices = @transform_1, window_bounds = array<i64: 32, 96>}, {pipeline_mode = #tpu.pipeline_mode<synchronous>, transform_indices = @transform_2, window_bounds = array<i64: 1, 96>}, {pipeline_mode = #tpu.pipeline_mode<synchronous>, transform_indices = @transform_3, window_bounds = array<i64: 32, 32>}, {pipeline_mode = #tpu.pipeline_mode<synchronous>, transform_indices = @transform_4, window_bounds = array<i64: 1, 32>}, {pipeline_mode = #tpu.pipeline_mode<synchronous>, transform_indices = @transform_5, window_bounds = array<i64: 32, 64>}, {pipeline_mode = #tpu.pipeline_mode<synchronous>, transform_indices = @transform_6, window_bounds = array<i64: 1, 64>}, {pipeline_mode = #tpu.pipeline_mode<synchronous>, transform_indices = @transform_7, window_bounds = array<i64: 64, 32>}, {pipeline_mode = #tpu.pipeline_mode<synchronous>, transform_indices = @transform_8, window_bounds = array<i64: 1, 32>}, {pipeline_mode = #tpu.pipeline_mode<synchronous>, transform_indices = @transform_9, window_bounds = array<i64: 1, 32>}, {pipeline_mode = #tpu.pipeline_mode<synchronous>, transform_indices = @transform_10, window_bounds = array<i64: 1, 32>}, {pipeline_mode = #tpu.pipeline_mode<synchronous>, transform_indices = @transform_11, window_bounds = array<i64: 1, 32>}, {pipeline_mode = #tpu.pipeline_mode<synchronous>, transform_indices = @transform_12, window_bounds = array<i64: 1, 32>}, {pipeline_mode = #tpu.pipeline_mode<synchronous>, transform_indices = @transform_13, window_bounds = array<i64: 1, 32>}, {pipeline_mode = #tpu.pipeline_mode<synchronous>, transform_indices = @transform_14, window_bounds = array<i64: 1, 32>}, {transform_indices = @transform_15, window_bounds = array<i64: 2, 8, 32>}]} {
    %c0 = arith.constant 0 : index
    %c0_0 = arith.constant 0 : index
    %c0_1 = arith.constant 0 : index
    %0 = vector.load %arg1[%c0, %c0_0, %c0_1] : memref<2x8x32xf32, #tpu.memory_space<vmem>>, vector<2x8x32xf32>
    %1 = vector.shape_cast %0 : vector<2x8x32xf32> to vector<16x32xf32>
    %2 = arith.truncf %1 : vector<16x32xf32> to vector<16x32xbf16>
    %c0_2 = arith.constant 0 : index
    %c0_3 = arith.constant 0 : index
    %3 = vector.load %arg2[%c0_2, %c0_3] : memref<32x96xbf16, #tpu.memory_space<vmem>>, vector<32x96xbf16>
    %cst = arith.constant dense<0.000000e+00> : vector<16x96xf32>
    %4 = tpu.matmul %2, %3, %cst {dimension_numbers = #tpu.dot_dimension_numbers<[1], [0], [0], [1], [0, 0, 1, 1], [], []>} : vector<16x32xbf16>, vector<32x96xbf16>, vector<16x96xf32> -> vector<16x96xf32>
    %c0_4 = arith.constant 0 : index
    %c0_5 = arith.constant 0 : index
    %5 = vector.load %arg3[%c0_4, %c0_5] : memref<1x96xf32, #tpu.memory_space<vmem>>, vector<1x96xf32>
    %6 = vector.broadcast %5 : vector<1x96xf32> to vector<16x96xf32>
    %7 = arith.addf %4, %6 : vector<16x96xf32>
    %8 = vector.extract_strided_slice %7 {offsets = [0, 0], sizes = [16, 32], strides = [1, 1]} : vector<16x96xf32> to vector<16x32xf32>
    %cst_6 = arith.constant 0.353553385 : f32
    %9 = vector.broadcast %cst_6 : f32 to vector<16x32xf32>
    %10 = arith.mulf %8, %9 : vector<16x32xf32>
    %11 = vector.shape_cast %10 : vector<16x32xf32> to vector<2x8x32xf32>
    %12 = vector.extract_strided_slice %7 {offsets = [0, 32], sizes = [16, 32], strides = [1, 1]} : vector<16x96xf32> to vector<16x32xf32>
    %13 = vector.shape_cast %12 : vector<16x32xf32> to vector<2x8x32xf32>
    %14 = vector.extract_strided_slice %7 {offsets = [0, 64], sizes = [16, 32], strides = [1, 1]} : vector<16x96xf32> to vector<16x32xf32>
    %15 = vector.shape_cast %14 : vector<16x32xf32> to vector<2x8x32xf32>
    %16 = vector.extract_strided_slice %11 {offsets = [0, 0, 0], sizes = [2, 8, 8], strides = [1, 1, 1]} : vector<2x8x32xf32> to vector<2x8x8xf32>
    %17 = arith.truncf %16 : vector<2x8x8xf32> to vector<2x8x8xbf16>
    %18 = vector.extract_strided_slice %13 {offsets = [0, 0, 0], sizes = [2, 8, 8], strides = [1, 1, 1]} : vector<2x8x32xf32> to vector<2x8x8xf32>
    %19 = arith.truncf %18 : vector<2x8x8xf32> to vector<2x8x8xbf16>
    %20 = vector.extract_strided_slice %15 {offsets = [0, 0, 0], sizes = [2, 8, 8], strides = [1, 1, 1]} : vector<2x8x32xf32> to vector<2x8x8xf32>
    %21 = arith.truncf %20 : vector<2x8x8xf32> to vector<2x8x8xbf16>
    "tpu.trace_start"() <{level = 10 : i32, message = "bqd,bkd->bqk"}> : () -> ()
    %cst_7 = arith.constant dense<0.000000e+00> : vector<2x8x8xf32>
    %22 = tpu.matmul %17, %19, %cst_7 {dimension_numbers = #tpu.dot_dimension_numbers<[2], [2], [1], [1], [0, 0, 0, 1, 1, 1], [0], [0]>} : vector<2x8x8xbf16>, vector<2x8x8xbf16>, vector<2x8x8xf32> -> vector<2x8x8xf32>
    "tpu.trace_stop"() : () -> ()
    %cst_8 = arith.constant dense<0xFF800000> : vector<2x8xf32>
    %23 = vector.multi_reduction <maximumf>, %22, %cst_8 [2] : vector<2x8x8xf32> to vector<2x8xf32>
    %24 = vector.shape_cast %23 : vector<2x8xf32> to vector<2x8x1xf32>
    %25 = vector.broadcast %24 : vector<2x8x1xf32> to vector<2x8x8xf32>
    %26 = arith.subf %22, %25 : vector<2x8x8xf32>
    %27 = math.exp %26 : vector<2x8x8xf32>
    %cst_9 = arith.constant dense<0.000000e+00> : vector<2x8xf32>
    %28 = vector.multi_reduction <add>, %27, %cst_9 [2] : vector<2x8x8xf32> to vector<2x8xf32>
    %29 = vector.shape_cast %28 : vector<2x8xf32> to vector<2x8x1xf32>
    %30 = tpu.reciprocal %29 {approx = true} : vector<2x8x1xf32> -> vector<2x8x1xf32>
    %31 = vector.broadcast %30 : vector<2x8x1xf32> to vector<2x8x8xf32>
    %32 = arith.mulf %27, %31 : vector<2x8x8xf32>
    %33 = arith.truncf %32 : vector<2x8x8xf32> to vector<2x8x8xbf16>
    "tpu.trace_start"() <{level = 10 : i32, message = "bqk,bkd->bqd"}> : () -> ()
    %cst_10 = arith.constant dense<0.000000e+00> : vector<2x8x8xf32>
    %34 = tpu.matmul %33, %21, %cst_10 {dimension_numbers = #tpu.dot_dimension_numbers<[2], [1], [1], [2], [0, 0, 0, 1, 1, 2], [0], [0]>} : vector<2x8x8xbf16>, vector<2x8x8xbf16>, vector<2x8x8xf32> -> vector<2x8x8xf32>
    "tpu.trace_stop"() : () -> ()
    %35 = vector.shape_cast %34 : vector<2x8x8xf32> to vector<16x8xf32>
    %36 = arith.truncf %35 : vector<16x8xf32> to vector<16x8xbf16>
    %c0_11 = arith.constant 0 : index
    %c0_12 = arith.constant 0 : index
    %37 = vector.load %arg17[%c0_11, %c0_12] : memref<16x32xbf16, #tpu.memory_space<vmem>>, vector<16x8xbf16>
    tpu.vector_store %arg17[%c0_11, %c0_12], %36 {strides = array<i32>} : memref<16x32xbf16, #tpu.memory_space<vmem>>, vector<16x8xbf16>,
    %38 = vector.extract_strided_slice %11 {offsets = [0, 0, 8], sizes = [2, 8, 8], strides = [1, 1, 1]} : vector<2x8x32xf32> to vector<2x8x8xf32>
    %39 = arith.truncf %38 : vector<2x8x8xf32> to vector<2x8x8xbf16>
    %40 = vector.extract_strided_slice %13 {offsets = [0, 0, 8], sizes = [2, 8, 8], strides = [1, 1, 1]} : vector<2x8x32xf32> to vector<2x8x8xf32>
    %41 = arith.truncf %40 : vector<2x8x8xf32> to vector<2x8x8xbf16>
    %42 = vector.extract_strided_slice %15 {offsets = [0, 0, 8], sizes = [2, 8, 8], strides = [1, 1, 1]} : vector<2x8x32xf32> to vector<2x8x8xf32>
    %43 = arith.truncf %42 : vector<2x8x8xf32> to vector<2x8x8xbf16>
    "tpu.trace_start"() <{level = 10 : i32, message = "bqd,bkd->bqk"}> : () -> ()
    %cst_13 = arith.constant dense<0.000000e+00> : vector<2x8x8xf32>
    %44 = tpu.matmul %39, %41, %cst_13 {dimension_numbers = #tpu.dot_dimension_numbers<[2], [2], [1], [1], [0, 0, 0, 1, 1, 1], [0], [0]>} : vector<2x8x8xbf16>, vector<2x8x8xbf16>, vector<2x8x8xf32> -> vector<2x8x8xf32>
    "tpu.trace_stop"() : () -> ()
    %cst_14 = arith.constant dense<0xFF800000> : vector<2x8xf32>
    %45 = vector.multi_reduction <maximumf>, %44, %cst_14 [2] : vector<2x8x8xf32> to vector<2x8xf32>
    %46 = vector.shape_cast %45 : vector<2x8xf32> to vector<2x8x1xf32>
    %47 = vector.broadcast %46 : vector<2x8x1xf32> to vector<2x8x8xf32>
    %48 = arith.subf %44, %47 : vector<2x8x8xf32>
    %49 = math.exp %48 : vector<2x8x8xf32>
    %cst_15 = arith.constant dense<0.000000e+00> : vector<2x8xf32>
    %50 = vector.multi_reduction <add>, %49, %cst_15 [2] : vector<2x8x8xf32> to vector<2x8xf32>
    %51 = vector.shape_cast %50 : vector<2x8xf32> to vector<2x8x1xf32>
    %52 = tpu.reciprocal %51 {approx = true} : vector<2x8x1xf32> -> vector<2x8x1xf32>
    %53 = vector.broadcast %52 : vector<2x8x1xf32> to vector<2x8x8xf32>
    %54 = arith.mulf %49, %53 : vector<2x8x8xf32>
    %55 = arith.truncf %54 : vector<2x8x8xf32> to vector<2x8x8xbf16>
    "tpu.trace_start"() <{level = 10 : i32, message = "bqk,bkd->bqd"}> : () -> ()
    %cst_16 = arith.constant dense<0.000000e+00> : vector<2x8x8xf32>
    %56 = tpu.matmul %55, %43, %cst_16 {dimension_numbers = #tpu.dot_dimension_numbers<[2], [1], [1], [2], [0, 0, 0, 1, 1, 2], [0], [0]>} : vector<2x8x8xbf16>, vector<2x8x8xbf16>, vector<2x8x8xf32> -> vector<2x8x8xf32>
    "tpu.trace_stop"() : () -> ()
    %57 = vector.shape_cast %56 : vector<2x8x8xf32> to vector<16x8xf32>
    %58 = arith.truncf %57 : vector<16x8xf32> to vector<16x8xbf16>
    %c0_17 = arith.constant 0 : index
    %c8 = arith.constant 8 : index
    %59 = vector.load %arg17[%c0_17, %c8] : memref<16x32xbf16, #tpu.memory_space<vmem>>, vector<16x8xbf16>
    tpu.vector_store %arg17[%c0_17, %c8], %58 {strides = array<i32>} : memref<16x32xbf16, #tpu.memory_space<vmem>>, vector<16x8xbf16>,
    %60 = vector.extract_strided_slice %11 {offsets = [0, 0, 16], sizes = [2, 8, 8], strides = [1, 1, 1]} : vector<2x8x32xf32> to vector<2x8x8xf32>
    %61 = arith.truncf %60 : vector<2x8x8xf32> to vector<2x8x8xbf16>
    %62 = vector.extract_strided_slice %13 {offsets = [0, 0, 16], sizes = [2, 8, 8], strides = [1, 1, 1]} : vector<2x8x32xf32> to vector<2x8x8xf32>
    %63 = arith.truncf %62 : vector<2x8x8xf32> to vector<2x8x8xbf16>
    %64 = vector.extract_strided_slice %15 {offsets = [0, 0, 16], sizes = [2, 8, 8], strides = [1, 1, 1]} : vector<2x8x32xf32> to vector<2x8x8xf32>
    %65 = arith.truncf %64 : vector<2x8x8xf32> to vector<2x8x8xbf16>
    "tpu.trace_start"() <{level = 10 : i32, message = "bqd,bkd->bqk"}> : () -> ()
    %cst_18 = arith.constant dense<0.000000e+00> : vector<2x8x8xf32>
    %66 = tpu.matmul %61, %63, %cst_18 {dimension_numbers = #tpu.dot_dimension_numbers<[2], [2], [1], [1], [0, 0, 0, 1, 1, 1], [0], [0]>} : vector<2x8x8xbf16>, vector<2x8x8xbf16>, vector<2x8x8xf32> -> vector<2x8x8xf32>
    "tpu.trace_stop"() : () -> ()
    %cst_19 = arith.constant dense<0xFF800000> : vector<2x8xf32>
    %67 = vector.multi_reduction <maximumf>, %66, %cst_19 [2] : vector<2x8x8xf32> to vector<2x8xf32>
    %68 = vector.shape_cast %67 : vector<2x8xf32> to vector<2x8x1xf32>
    %69 = vector.broadcast %68 : vector<2x8x1xf32> to vector<2x8x8xf32>
    %70 = arith.subf %66, %69 : vector<2x8x8xf32>
    %71 = math.exp %70 : vector<2x8x8xf32>
    %cst_20 = arith.constant dense<0.000000e+00> : vector<2x8xf32>
    %72 = vector.multi_reduction <add>, %71, %cst_20 [2] : vector<2x8x8xf32> to vector<2x8xf32>
    %73 = vector.shape_cast %72 : vector<2x8xf32> to vector<2x8x1xf32>
    %74 = tpu.reciprocal %73 {approx = true} : vector<2x8x1xf32> -> vector<2x8x1xf32>
    %75 = vector.broadcast %74 : vector<2x8x1xf32> to vector<2x8x8xf32>
    %76 = arith.mulf %71, %75 : vector<2x8x8xf32>
    %77 = arith.truncf %76 : vector<2x8x8xf32> to vector<2x8x8xbf16>
    "tpu.trace_start"() <{level = 10 : i32, message = "bqk,bkd->bqd"}> : () -> ()
    %cst_21 = arith.constant dense<0.000000e+00> : vector<2x8x8xf32>
    %78 = tpu.matmul %77, %65, %cst_21 {dimension_numbers = #tpu.dot_dimension_numbers<[2], [1], [1], [2], [0, 0, 0, 1, 1, 2], [0], [0]>} : vector<2x8x8xbf16>, vector<2x8x8xbf16>, vector<2x8x8xf32> -> vector<2x8x8xf32>
    "tpu.trace_stop"() : () -> ()
    %79 = vector.shape_cast %78 : vector<2x8x8xf32> to vector<16x8xf32>
    %80 = arith.truncf %79 : vector<16x8xf32> to vector<16x8xbf16>
    %c0_22 = arith.constant 0 : index
    %c16 = arith.constant 16 : index
    %81 = vector.load %arg17[%c0_22, %c16] : memref<16x32xbf16, #tpu.memory_space<vmem>>, vector<16x8xbf16>
    tpu.vector_store %arg17[%c0_22, %c16], %80 {strides = array<i32>} : memref<16x32xbf16, #tpu.memory_space<vmem>>, vector<16x8xbf16>,
    %82 = vector.extract_strided_slice %11 {offsets = [0, 0, 24], sizes = [2, 8, 8], strides = [1, 1, 1]} : vector<2x8x32xf32> to vector<2x8x8xf32>
    %83 = arith.truncf %82 : vector<2x8x8xf32> to vector<2x8x8xbf16>
    %84 = vector.extract_strided_slice %13 {offsets = [0, 0, 24], sizes = [2, 8, 8], strides = [1, 1, 1]} : vector<2x8x32xf32> to vector<2x8x8xf32>
    %85 = arith.truncf %84 : vector<2x8x8xf32> to vector<2x8x8xbf16>
    %86 = vector.extract_strided_slice %15 {offsets = [0, 0, 24], sizes = [2, 8, 8], strides = [1, 1, 1]} : vector<2x8x32xf32> to vector<2x8x8xf32>
    %87 = arith.truncf %86 : vector<2x8x8xf32> to vector<2x8x8xbf16>
    "tpu.trace_start"() <{level = 10 : i32, message = "bqd,bkd->bqk"}> : () -> ()
    %cst_23 = arith.constant dense<0.000000e+00> : vector<2x8x8xf32>
    %88 = tpu.matmul %83, %85, %cst_23 {dimension_numbers = #tpu.dot_dimension_numbers<[2], [2], [1], [1], [0, 0, 0, 1, 1, 1], [0], [0]>} : vector<2x8x8xbf16>, vector<2x8x8xbf16>, vector<2x8x8xf32> -> vector<2x8x8xf32>
    "tpu.trace_stop"() : () -> ()
    %cst_24 = arith.constant dense<0xFF800000> : vector<2x8xf32>
    %89 = vector.multi_reduction <maximumf>, %88, %cst_24 [2] : vector<2x8x8xf32> to vector<2x8xf32>
    %90 = vector.shape_cast %89 : vector<2x8xf32> to vector<2x8x1xf32>
    %91 = vector.broadcast %90 : vector<2x8x1xf32> to vector<2x8x8xf32>
    %92 = arith.subf %88, %91 : vector<2x8x8xf32>
    %93 = math.exp %92 : vector<2x8x8xf32>
    %cst_25 = arith.constant dense<0.000000e+00> : vector<2x8xf32>
    %94 = vector.multi_reduction <add>, %93, %cst_25 [2] : vector<2x8x8xf32> to vector<2x8xf32>
    %95 = vector.shape_cast %94 : vector<2x8xf32> to vector<2x8x1xf32>
    %96 = tpu.reciprocal %95 {approx = true} : vector<2x8x1xf32> -> vector<2x8x1xf32>
    %97 = vector.broadcast %96 : vector<2x8x1xf32> to vector<2x8x8xf32>
    %98 = arith.mulf %93, %97 : vector<2x8x8xf32>
    %99 = arith.truncf %98 : vector<2x8x8xf32> to vector<2x8x8xbf16>
    "tpu.trace_start"() <{level = 10 : i32, message = "bqk,bkd->bqd"}> : () -> ()
    %cst_26 = arith.constant dense<0.000000e+00> : vector<2x8x8xf32>
    %100 = tpu.matmul %99, %87, %cst_26 {dimension_numbers = #tpu.dot_dimension_numbers<[2], [1], [1], [2], [0, 0, 0, 1, 1, 2], [0], [0]>} : vector<2x8x8xbf16>, vector<2x8x8xbf16>, vector<2x8x8xf32> -> vector<2x8x8xf32>
    "tpu.trace_stop"() : () -> ()
    %101 = vector.shape_cast %100 : vector<2x8x8xf32> to vector<16x8xf32>
    %102 = arith.truncf %101 : vector<16x8xf32> to vector<16x8xbf16>
    %c0_27 = arith.constant 0 : index
    %c24 = arith.constant 24 : index
    %103 = vector.load %arg17[%c0_27, %c24] : memref<16x32xbf16, #tpu.memory_space<vmem>>, vector<16x8xbf16>
    tpu.vector_store %arg17[%c0_27, %c24], %102 {strides = array<i32>} : memref<16x32xbf16, #tpu.memory_space<vmem>>, vector<16x8xbf16>,
    %c0_28 = arith.constant 0 : index
    %c0_29 = arith.constant 0 : index
    %104 = vector.load %arg17[%c0_28, %c0_29] : memref<16x32xbf16, #tpu.memory_space<vmem>>, vector<16x32xbf16>
    %c0_30 = arith.constant 0 : index
    %c0_31 = arith.constant 0 : index
    %105 = vector.load %arg4[%c0_30, %c0_31] : memref<32x32xbf16, #tpu.memory_space<vmem>>, vector<32x32xbf16>
    %cst_32 = arith.constant dense<0.000000e+00> : vector<16x32xf32>
    %106 = tpu.matmul %104, %105, %cst_32 {dimension_numbers = #tpu.dot_dimension_numbers<[1], [0], [0], [1], [0, 0, 1, 1], [], []>} : vector<16x32xbf16>, vector<32x32xbf16>, vector<16x32xf32> -> vector<16x32xf32>
    %c0_33 = arith.constant 0 : index
    %c0_34 = arith.constant 0 : index
    %107 = vector.load %arg5[%c0_33, %c0_34] : memref<1x32xf32, #tpu.memory_space<vmem>>, vector<1x32xf32>
    %108 = vector.broadcast %107 : vector<1x32xf32> to vector<16x32xf32>
    %109 = arith.addf %106, %108 : vector<16x32xf32>
    %110 = arith.addf %1, %109 : vector<16x32xf32>
    %c0_35 = arith.constant 0 : index
    %c0_36 = arith.constant 0 : index
    %111 = vector.load %arg10[%c0_35, %c0_36] : memref<1x32xf32, #tpu.memory_space<vmem>>, vector<1x32xf32>
    %c0_37 = arith.constant 0 : index
    %c0_38 = arith.constant 0 : index
    %112 = vector.load %arg11[%c0_37, %c0_38] : memref<1x32xf32, #tpu.memory_space<vmem>>, vector<1x32xf32>
    %cst_39 = arith.constant dense<0.000000e+00> : vector<16xf32>
    %113 = vector.multi_reduction <add>, %110, %cst_39 [1] : vector<16x32xf32> to vector<16xf32>
    %114 = vector.shape_cast %113 : vector<16xf32> to vector<16x1xf32>
    %cst_40 = arith.constant 3.200000e+01 : f32
    %115 = vector.broadcast %cst_40 : f32 to vector<16x1xf32>
    %116 = arith.divf %114, %115 : vector<16x1xf32>
    %117 = vector.broadcast %116 : vector<16x1xf32> to vector<16x32xf32>
    %118 = arith.subf %110, %117 : vector<16x32xf32>
    %119 = arith.mulf %118, %118 : vector<16x32xf32>
    %cst_41 = arith.constant dense<0.000000e+00> : vector<16xf32>
    %120 = vector.multi_reduction <add>, %119, %cst_41 [1] : vector<16x32xf32> to vector<16xf32>
    %121 = vector.shape_cast %120 : vector<16xf32> to vector<16x1xf32>
    %cst_42 = arith.constant 3.200000e+01 : f32
    %122 = vector.broadcast %cst_42 : f32 to vector<16x1xf32>
    %123 = arith.divf %121, %122 : vector<16x1xf32>
    %cst_43 = arith.constant 9.99999974E-6 : f32
    %124 = vector.broadcast %cst_43 : f32 to vector<16x1xf32>
    %125 = arith.addf %123, %124 : vector<16x1xf32>
    %126 = math.rsqrt %125 : vector<16x1xf32>
    %127 = vector.broadcast %126 : vector<16x1xf32> to vector<16x32xf32>
    %128 = arith.mulf %118, %127 : vector<16x32xf32>
    %129 = vector.broadcast %111 : vector<1x32xf32> to vector<16x32xf32>
    %130 = arith.mulf %128, %129 : vector<16x32xf32>
    %131 = vector.broadcast %112 : vector<1x32xf32> to vector<16x32xf32>
    %132 = arith.addf %130, %131 : vector<16x32xf32>
    %133 = arith.truncf %132 : vector<16x32xf32> to vector<16x32xbf16>
    %cst_44 = arith.constant 0.000000e+00 : f32
    %134 = vector.broadcast %cst_44 : f32 to vector<16x32xf32>
    %c0_45 = arith.constant 0 : index
    %c0_46 = arith.constant 0 : index
    %135 = vector.load %arg6[%c0_45, %c0_46] : memref<32x64xbf16, #tpu.memory_space<vmem>>, vector<32x64xbf16>
    %cst_47 = arith.constant dense<0.000000e+00> : vector<16x64xf32>
    %136 = tpu.matmul %133, %135, %cst_47 {dimension_numbers = #tpu.dot_dimension_numbers<[1], [0], [0], [1], [0, 0, 1, 1], [], []>} : vector<16x32xbf16>, vector<32x64xbf16>, vector<16x64xf32> -> vector<16x64xf32>
    %c0_48 = arith.constant 0 : index
    %c0_49 = arith.constant 0 : index
    %137 = vector.load %arg7[%c0_48, %c0_49] : memref<1x64xf32, #tpu.memory_space<vmem>>, vector<1x64xf32>
    %138 = vector.broadcast %137 : vector<1x64xf32> to vector<16x64xf32>
    %139 = arith.addf %136, %138 : vector<16x64xf32>
    %cst_50 = arith.constant 0.000000e+00 : f32
    %140 = vector.broadcast %cst_50 : f32 to vector<16x64xf32>
    %141 = arith.maximumf %139, %140 : vector<16x64xf32>
    %142 = arith.truncf %141 : vector<16x64xf32> to vector<16x64xbf16>
    %c0_51 = arith.constant 0 : index
    %c0_52 = arith.constant 0 : index
    %143 = vector.load %arg8[%c0_51, %c0_52] : memref<64x32xbf16, #tpu.memory_space<vmem>>, vector<64x32xbf16>
    %cst_53 = arith.constant dense<0.000000e+00> : vector<16x32xf32>
    %144 = tpu.matmul %142, %143, %cst_53 {dimension_numbers = #tpu.dot_dimension_numbers<[1], [0], [0], [1], [0, 0, 1, 1], [], []>} : vector<16x64xbf16>, vector<64x32xbf16>, vector<16x32xf32> -> vector<16x32xf32>
    %145 = arith.addf %134, %144 : vector<16x32xf32>
    %c0_54 = arith.constant 0 : index
    %c0_55 = arith.constant 0 : index
    %146 = vector.load %arg9[%c0_54, %c0_55] : memref<1x32xf32, #tpu.memory_space<vmem>>, vector<1x32xf32>
    %147 = vector.broadcast %146 : vector<1x32xf32> to vector<16x32xf32>
    %148 = arith.addf %145, %147 : vector<16x32xf32>
    %149 = arith.addf %132, %148 : vector<16x32xf32>
    %c0_56 = arith.constant 0 : index
    %c0_57 = arith.constant 0 : index
    %150 = vector.load %arg12[%c0_56, %c0_57] : memref<1x32xf32, #tpu.memory_space<vmem>>, vector<1x32xf32>
    %c0_58 = arith.constant 0 : index
    %c0_59 = arith.constant 0 : index
    %151 = vector.load %arg13[%c0_58, %c0_59] : memref<1x32xf32, #tpu.memory_space<vmem>>, vector<1x32xf32>
    %cst_60 = arith.constant dense<0.000000e+00> : vector<16xf32>
    %152 = vector.multi_reduction <add>, %149, %cst_60 [1] : vector<16x32xf32> to vector<16xf32>
    %153 = vector.shape_cast %152 : vector<16xf32> to vector<16x1xf32>
    %cst_61 = arith.constant 3.200000e+01 : f32
    %154 = vector.broadcast %cst_61 : f32 to vector<16x1xf32>
    %155 = arith.divf %153, %154 : vector<16x1xf32>
    %156 = vector.broadcast %155 : vector<16x1xf32> to vector<16x32xf32>
    %157 = arith.subf %149, %156 : vector<16x32xf32>
    %158 = arith.mulf %157, %157 : vector<16x32xf32>
    %cst_62 = arith.constant dense<0.000000e+00> : vector<16xf32>
    %159 = vector.multi_reduction <add>, %158, %cst_62 [1] : vector<16x32xf32> to vector<16xf32>
    %160 = vector.shape_cast %159 : vector<16xf32> to vector<16x1xf32>
    %cst_63 = arith.constant 3.200000e+01 : f32
    %161 = vector.broadcast %cst_63 : f32 to vector<16x1xf32>
    %162 = arith.divf %160, %161 : vector<16x1xf32>
    %cst_64 = arith.constant 9.99999974E-6 : f32
    %163 = vector.broadcast %cst_64 : f32 to vector<16x1xf32>
    %164 = arith.addf %162, %163 : vector<16x1xf32>
    %165 = math.rsqrt %164 : vector<16x1xf32>
    %166 = vector.broadcast %165 : vector<16x1xf32> to vector<16x32xf32>
    %167 = arith.mulf %157, %166 : vector<16x32xf32>
    %168 = vector.broadcast %150 : vector<1x32xf32> to vector<16x32xf32>
    %169 = arith.mulf %167, %168 : vector<16x32xf32>
    %170 = vector.broadcast %151 : vector<1x32xf32> to vector<16x32xf32>
    %171 = arith.addf %169, %170 : vector<16x32xf32>
    %c0_65 = arith.constant 0 : index
    %c0_66 = arith.constant 0 : index
    %172 = vector.load %arg14[%c0_65, %c0_66] : memref<1x32xf32, #tpu.memory_space<vmem>>, vector<1x32xf32>
    %c0_67 = arith.constant 0 : index
    %c0_68 = arith.constant 0 : index
    %173 = vector.load %arg15[%c0_67, %c0_68] : memref<1x32xf32, #tpu.memory_space<vmem>>, vector<1x32xf32>
    %cst_69 = arith.constant dense<0.000000e+00> : vector<16xf32>
    %174 = vector.multi_reduction <add>, %171, %cst_69 [1] : vector<16x32xf32> to vector<16xf32>
    %175 = vector.shape_cast %174 : vector<16xf32> to vector<16x1xf32>
    %cst_70 = arith.constant 3.200000e+01 : f32
    %176 = vector.broadcast %cst_70 : f32 to vector<16x1xf32>
    %177 = arith.divf %175, %176 : vector<16x1xf32>
    %178 = vector.broadcast %177 : vector<16x1xf32> to vector<16x32xf32>
    %179 = arith.subf %171, %178 : vector<16x32xf32>
    %180 = arith.mulf %179, %179 : vector<16x32xf32>
    %cst_71 = arith.constant dense<0.000000e+00> : vector<16xf32>
    %181 = vector.multi_reduction <add>, %180, %cst_71 [1] : vector<16x32xf32> to vector<16xf32>
    %182 = vector.shape_cast %181 : vector<16xf32> to vector<16x1xf32>
    %cst_72 = arith.constant 3.200000e+01 : f32
    %183 = vector.broadcast %cst_72 : f32 to vector<16x1xf32>
    %184 = arith.divf %182, %183 : vector<16x1xf32>
    %cst_73 = arith.constant 9.99999974E-6 : f32
    %185 = vector.broadcast %cst_73 : f32 to vector<16x1xf32>
    %186 = arith.addf %184, %185 : vector<16x1xf32>
    %187 = math.rsqrt %186 : vector<16x1xf32>
    %188 = vector.broadcast %187 : vector<16x1xf32> to vector<16x32xf32>
    %189 = arith.mulf %179, %188 : vector<16x32xf32>
    %190 = vector.broadcast %172 : vector<1x32xf32> to vector<16x32xf32>
    %191 = arith.mulf %189, %190 : vector<16x32xf32>
    %192 = vector.broadcast %173 : vector<1x32xf32> to vector<16x32xf32>
    %193 = arith.addf %191, %192 : vector<16x32xf32>
    %194 = vector.shape_cast %193 : vector<16x32xf32> to vector<2x8x32xf32>
    %c0_74 = arith.constant 0 : index
    %c0_75 = arith.constant 0 : index
    %c0_76 = arith.constant 0 : index
    %195 = vector.load %arg16[%c0_74, %c0_75, %c0_76] : memref<2x8x32xf32, #tpu.memory_space<vmem>>, vector<2x8x32xf32>
    tpu.vector_store %arg16[%c0_74, %c0_75, %c0_76], %194 {strides = array<i32>} : memref<2x8x32xf32, #tpu.memory_space<vmem>>, vector<2x8x32xf32>,
    return
  }
  func.func @transform_0(%arg0: i32) -> (i32, i32, i32) {
    %c0_i32 = arith.constant 0 : i32
    %c0_i32_0 = arith.constant 0 : i32
    %c0_i32_1 = arith.constant 0 : i32
    return %arg0, %c0_i32, %c0_i32_0 : i32, i32, i32
  }
  func.func @transform_1(%arg0: i32) -> (i32, i32) {
    %c0_i32 = arith.constant 0 : i32
    %c0_i32_0 = arith.constant 0 : i32
    %c0_i32_1 = arith.constant 0 : i32
    return %c0_i32, %c0_i32_0 : i32, i32
  }
  func.func @transform_2(%arg0: i32) -> (i32, i32) {
    %c0_i32 = arith.constant 0 : i32
    %c0_i32_0 = arith.constant 0 : i32
    %c0_i32_1 = arith.constant 0 : i32
    return %c0_i32, %c0_i32_0 : i32, i32
  }
  func.func @transform_3(%arg0: i32) -> (i32, i32) {
    %c0_i32 = arith.constant 0 : i32
    %c0_i32_0 = arith.constant 0 : i32
    %c0_i32_1 = arith.constant 0 : i32
    return %c0_i32, %c0_i32_0 : i32, i32
  }
  func.func @transform_4(%arg0: i32) -> (i32, i32) {
    %c0_i32 = arith.constant 0 : i32
    %c0_i32_0 = arith.constant 0 : i32
    %c0_i32_1 = arith.constant 0 : i32
    return %c0_i32, %c0_i32_0 : i32, i32
  }
  func.func @transform_5(%arg0: i32) -> (i32, i32) {
    %c0_i32 = arith.constant 0 : i32
    %c0_i32_0 = arith.constant 0 : i32
    %c0_i32_1 = arith.constant 0 : i32
    return %c0_i32, %c0_i32_0 : i32, i32
  }
  func.func @transform_6(%arg0: i32) -> (i32, i32) {
    %c0_i32 = arith.constant 0 : i32
    %c0_i32_0 = arith.constant 0 : i32
    %c0_i32_1 = arith.constant 0 : i32
    return %c0_i32, %c0_i32_0 : i32, i32
  }
  func.func @transform_7(%arg0: i32) -> (i32, i32) {
    %c0_i32 = arith.constant 0 : i32
    %c0_i32_0 = arith.constant 0 : i32
    %c0_i32_1 = arith.constant 0 : i32
    return %c0_i32, %c0_i32_0 : i32, i32
  }
  func.func @transform_8(%arg0: i32) -> (i32, i32) {
    %c0_i32 = arith.constant 0 : i32
    %c0_i32_0 = arith.constant 0 : i32
    %c0_i32_1 = arith.constant 0 : i32
    return %c0_i32, %c0_i32_0 : i32, i32
  }
  func.func @transform_9(%arg0: i32) -> (i32, i32) {
    %c0_i32 = arith.constant 0 : i32
    %c0_i32_0 = arith.constant 0 : i32
    %c0_i32_1 = arith.constant 0 : i32
    return %c0_i32, %c0_i32_0 : i32, i32
  }
  func.func @transform_10(%arg0: i32) -> (i32, i32) {
    %c0_i32 = arith.constant 0 : i32
    %c0_i32_0 = arith.constant 0 : i32
    %c0_i32_1 = arith.constant 0 : i32
    return %c0_i32, %c0_i32_0 : i32, i32
  }
  func.func @transform_11(%arg0: i32) -> (i32, i32) {
    %c0_i32 = arith.constant 0 : i32
    %c0_i32_0 = arith.constant 0 : i32
    %c0_i32_1 = arith.constant 0 : i32
    return %c0_i32, %c0_i32_0 : i32, i32
  }
  func.func @transform_12(%arg0: i32) -> (i32, i32) {
    %c0_i32 = arith.constant 0 : i32
    %c0_i32_0 = arith.constant 0 : i32
    %c0_i32_1 = arith.constant 0 : i32
    return %c0_i32, %c0_i32_0 : i32, i32
  }
  func.func @transform_13(%arg0: i32) -> (i32, i32) {
    %c0_i32 = arith.constant 0 : i32
    %c0_i32_0 = arith.constant 0 : i32
    %c0_i32_1 = arith.constant 0 : i32
    return %c0_i32, %c0_i32_0 : i32, i32
  }
  func.func @transform_14(%arg0: i32) -> (i32, i32) {
    %c0_i32 = arith.constant 0 : i32
    %c0_i32_0 = arith.constant 0 : i32
    %c0_i32_1 = arith.constant 0 : i32
    return %c0_i32, %c0_i32_0 : i32, i32
  }
  func.func @transform_15(%arg0: i32) -> (i32, i32, i32) {
    %c0_i32 = arith.constant 0 : i32
    %c0_i32_0 = arith.constant 0 : i32
    %c0_i32_1 = arith.constant 0 : i32
    return %arg0, %c0_i32, %c0_i32_0 : i32, i32, i32
  }
}

</mosaic_0001>

<bundles_post_ra>
// kernel: multi_stream_encoder_forward.2
= control target key start
LH: loop header
LB: loop body
LE: loop exit
PB: predicated region body
PF: predicated region fallthrough
CT: control target
= control target key end

     0   :  { %v1744_v0 = vmov 0.0   ;;  %vm1745_vm0 = vmmov 0   ;;  %vm77_vm1 = vcmask 261120   ;;  %vm131_vm2 = vcmask 64512   ;;  %s1748_s27 = smov 88   ;;  %s1749_s28 = smov 120   ;;  %s2095_s1 = inlined_call_operand.vmem [shape: bf16[32,96], index: 1, kind: input, shape index: {}]   ;;  %s2096_s0 = inlined_call_operand.vmem [shape: f32[2,8,32], index: 0, kind: input, shape index: {}]   ;;  %s2097_s2 = inlined_call_operand.vmem [shape: f32[1,96], index: 2, kind: input, shape index: {}]   ;;  %s2098_s3 = inlined_call_operand.vmem [shape: bf16[32,32], index: 3, kind: input, shape index: {}]   ;;  %s2099_s4 = inlined_call_operand.vmem [shape: f32[1,32], index: 4, kind: input, shape index: {}]   ;;  %s2100_s5 = inlined_call_operand.vmem [shape: bf16[32,64], index: 5, kind: input, shape index: {}]   ;;  %s2101_s7 = inlined_call_operand.vmem [shape: bf16[64,32], index: 7, kind: input, shape index: {}]   ;;  %s2102_s9 = inlined_call_operand.vmem [shape: f32[1,32], index: 9, kind: input, shape index: {}]   ;;  %s2103_s10 = inlined_call_operand.vmem [shape: f32[1,32], index: 10, kind: input, shape index: {}]   ;;  %s2104_s6 = inlined_call_operand.vmem [shape: f32[1,64], index: 6, kind: input, shape index: {}]   ;;  %s2105_s8 = inlined_call_operand.vmem [shape: f32[1,32], index: 8, kind: input, shape index: {}]   ;;  %s2106_s11 = inlined_call_operand.vmem [shape: f32[1,32], index: 11, kind: input, shape index: {}]   ;;  %s2107_s12 = inlined_call_operand.vmem [shape: f32[1,32], index: 12, kind: input, shape index: {}]   ;;  %s2108_s13 = inlined_call_operand.vmem [shape: f32[1,32], index: 13, kind: input, shape index: {}]   ;;  %s2109_s14 = inlined_call_operand.vmem [shape: f32[1,32], index: 14, kind: input, shape index: {}]   ;;  %s2110_s15 = inlined_call_operand.vmem [shape: f32[2,8,32], index: 15, kind: output, shape index: {}]  }
   0x1   :  { %1541 = vmatprep.subr.bf16.mxu0 %v1744_v0  ;;  %v1689_v1 = vld [vmem:[%s2095_s1 + $0x8] sm:$0xff]   ;;  %1545 = vmatprep.mubr.msk.bf16.mxu0 %vm1745_vm0, %v1744_v0  ;;  %v1690_v2 = vld [vmem:[%s2095_s1] sm:$0xff]   ;;  %vm256_vm3 = vcmask 1043456   ;;  %vm356_vm4 = vcmask 60416   ;;  %s1750_s29 = smov 56   ;;  %s1751_s30 = smov 80  }
   0x2   :  { %1549 = vmatprep.subr.bf16.mxu1 %v1744_v0  ;;  %1551 = vmatprep.mubr.msk.bf16.mxu1 %vm1745_vm0, %v1744_v0  ;;  %v1855_v3 = vld [vmem:[%s2096_s0] sm:$0xff]  ;;  %v1860_v4 = vld [vmem:[%s2096_s0 + $0x8] sm:$0xff]  ;;  %s1746_s0 = smov 96   ;;  %s1752_s16 = smov 112   ;;  %vm593_vm5 = vcmask 126016   ;;  %vm828_vm6 = vcmask 191616  }
   0x3   :  { %1542 = vmatpush3.bf16.msra.mxu0 %v1689_v1  ;;  %v53_v5 = vpack.c.bf16 %v1860_v4, %v1855_v3  ;;  %v1438_v6 = vld [vmem:[%s2097_s2] ss:$0 sm:$0xff]  ;;  %s1747_s2 = smov 64   ;;  %s1753_s17 = smov 48   ;;  %vm1063_vm7 = vcmask 257216   ;;  %vm1297_vm8 = vcmask 523264  }
   0x4   :  { %1543 = vmatprep.subr.bf16.mxu0 %v1744_v0  ;;  %s1754_s18 = smov 72   ;;  %s1755_s19 = smov 104  }
   0x5   :  { %s1756_s20 = smov 40   ;;  %s1757_s21 = smov 8  }
   0x6   :  { %s1758_s22 = smov 16   ;;  %s1759_s26 = smov 24  }
   0x7   :  { %1544 = vmatpush3.bf16.msra.mxu0 %v1690_v2 }
   0x8   :  { %1555 = vmatprep.subr.bf16.mxu0 %v1744_v0 }
   0xa   :  { %1546 = vmatmul.mubr.msk.bf16.vlgmr.msra.gmra.mxu0 %vm77_vm1, %v53_v5 }
   0xb   :  { %1557 = vmatprep.mubr.msk.bf16.mxu0 %vm1745_vm0, %v1744_v0 }
  0xca   :  { %v115_v7 = vpop.f32.mrf.mxu0 }
  0xcb   :  { %v116_v8 = vadd.f32 %v1438_v6, %v115_v7 }
  0xcc   :  { %v1547_v9 = vpop.f32.mrf.mxu0 }
  0xcd   :  { %v1872_v10 = vpack.c.bf16 %v116_v8, %v116_v8  ;;  %v122_v17 = vmul.f32 0.35355338, %v116_v8 }
  0xce   :  { %v118_v11 = vpop.f32.mrf.mxu0 }
  0xcf   :  { %v119_v12 = vadd.f32 %v1438_v6, %v118_v11  ;;  %129 = vrot.lane.b32.xlu0 %v1872_v10, %s1746_s0  ;;  %v1881_v20 = vpack.c.bf16 %v122_v17, %v122_v17 }
  0xd0   :  { %v1548_v13 = vpop.f32.mrf.mxu0 }
  0xd1   :  { %v1875_v14 = vpack.c.bf16 %v119_v12, %v119_v12  ;;  %v123_v21 = vmul.f32 0.35355338, %v119_v12 }
  0xd3   :  { %179 = vrot.lane.b32.xlu0 %v1875_v14, %s1746_s0  ;;  %v1888_v22 = vpack.c.bf16 %v123_v21, %v123_v21 }
 0x141   :  { %v130_v15 = vpop.permute.xlu0 %129 }
 0x142   :  { %v136_v16 = vsel %vm131_vm2, %v130_v15, 0 }
 0x143   :  { %1550 = vmatpush3.bf16.xpose.msra.mxu1 %v136_v16 }
 0x144   :  { %1561 = vmatprep.subr.bf16.mxu1 %v1744_v0 }
 0x145   :  { %v180_v18 = vpop.permute.xlu0 %179 }
 0x146   :  { %v185_v19 = vsel %vm131_vm2, %v180_v18, 0 }
 0x147   :  { %1556 = vmatpush3.bf16.xpose.msra.mxu0 %v185_v19 }
 0x148   :  { %1567 = vmatprep.subr.bf16.mxu0 %v1744_v0 }
 0x14a   :  { %1552 = vmatmul.mubr.msk.bf16.vlgmr.msra.gmra.mxu1 %vm131_vm2, %v1881_v20 }
 0x14b   :  { %1563 = vmatprep.mubr.msk.bf16.mxu1 %vm1745_vm0, %v1744_v0 }
 0x14e   :  { %1558 = vmatmul.mubr.msk.bf16.vlgmr.msra.gmra.mxu0 %vm131_vm2, %v1888_v22 }
 0x14f   :  { %1569 = vmatprep.mubr.msk.bf16.mxu0 %vm1745_vm0, %v1744_v0 }
 0x20a   :  { %v172_v23 = vpop.f32.mrf.mxu1 }
 0x20b   :  { %v227_v24 = vsel %vm131_vm2, %v172_v23, -inf }
 0x20c   :  { %228 = vmax.xlane.f32.xlu1 %v227_v24  ;;  %v1553_v25 = vpop.f32.mrf.mxu1 }
 0x20e   :  { %v175_v26 = vpop.f32.mrf.mxu1  ;;  %v221_v27 = vpop.f32.mrf.mxu0 }
 0x20f   :  { %v230_v28 = vsel %vm131_vm2, %v221_v27, -inf }
 0x210   :  { %v1554_v29 = vpop.f32.mrf.mxu1  ;;  %231 = vmax.xlane.f32.xlu1 %v230_v28  ;;  %v1559_v30 = vpop.f32.mrf.mxu0 }
 0x212   :  { %v224_v31 = vpop.f32.mrf.mxu0 }
 0x214   :  { %v1560_v32 = vpop.f32.mrf.mxu0 }
 0x221   :  { %251 = vrot.lane.b32.xlu1 %v1872_v10, %s1747_s2 }
 0x225   :  { %300 = vrot.lane.b32.xlu1 %v1875_v14, %s1747_s2 }
 0x229   :  { %362 = vrot.lane.b32.xlu1 %v1872_v10, %s1748_s27 }
 0x295   :  { %v229_v33 = vpop.xlane.xlu1 %228 }
 0x296   :  { %v233_v34 = vsub.f32 %v172_v23, %v229_v33 }
 0x298   :  { %v235_v35 = vmul.f32 1.442695, %v233_v34 }
 0x299   :  { %v232_v36 = vpop.xlane.xlu1 %231 }
 0x29a   :  { %1700 = vpow2.f32 %v235_v35  ;;  %v234_v37 = vsub.f32 %v221_v27, %v232_v36 }
 0x29c   :  { %v237_v38 = vmul.f32 1.442695, %v234_v37 }
 0x29d   :  { %v252_v39 = vpop.permute.xlu1 %251 }
 0x29e   :  { %1702 = vpow2.f32 %v237_v38  ;;  %v258_v40 = vsel %vm256_vm3, %v252_v39, 0 }
 0x29f   :  { %1562 = vmatpush3.bf16.msra.mxu1 %v258_v40 }
 0x2a0   :  { %1573 = vmatprep.subr.bf16.mxu1 %v1744_v0 }
 0x2a1   :  { %v301_v41 = vpop.permute.xlu1 %300 }
 0x2a2   :  { %v306_v42 = vsel %vm256_vm3, %v301_v41, 0 }
 0x2a3   :  { %1568 = vmatpush3.bf16.msra.mxu0 %v306_v42 }
 0x2a4   :  { %1579 = vmatprep.subr.bf16.mxu0 %v1744_v0 }
 0x2a5   :  { %v363_v47 = vpop.permute.xlu1 %362 }
 0x2a6   :  { %v368_v54 = vsel %vm131_vm2, %v363_v47, 0 }
 0x2a7   :  { %v1701_v43 = vpop.eup %1700 }
 0x2a8   :  { %v239_v44 = vsel %vm131_vm2, %v1701_v43, 0.0 }
 0x2a9   :  { %240 = vadd.xlane.f32.xlu0 %v239_v44 }
 0x2ab   :  { %v1703_v45 = vpop.eup %1702 }
 0x2ac   :  { %v242_v46 = vsel %vm131_vm2, %v1703_v45, 0.0 }
 0x2ad   :  { %243 = vadd.xlane.f32.xlu1 %v242_v46 }
 0x2be   :  { %413 = vrot.lane.b32.xlu1 %v1875_v14, %s1748_s27 }
 0x2bf   :  { %360 = vrot.lane.b32.xlu0 %v1881_v20, %s1749_s28 }
 0x2c2   :  { %411 = vrot.lane.b32.xlu1 %v1888_v22, %s1749_s28 }
 0x332   :  { %v241_v48 = vpop.xlane.xlu0 %240 }
 0x333   :  { %1704 = vrcp.f32 %v241_v48 }
 0x336   :  { %v244_v49 = vpop.xlane.xlu1 %243  ;;  %v361_v59 = vpop.permute.xlu0 %360 }
 0x337   :  { %1706 = vrcp.f32 %v244_v49 }
 0x33a   :  { %v414_v56 = vpop.permute.xlu1 %413 }
 0x33b   :  { %v419_v58 = vsel %vm131_vm2, %v414_v56, 0 }
 0x33e   :  { %v412_v60 = vpop.permute.xlu1 %411 }
 0x340   :  { %v1705_v50 = vpop.eup %1704 }
 0x341   :  { %v247_v51 = vmul.f32 %v1705_v50, %v1701_v43 }
 0x343   :  { %v249_v52 = vpack.c.bf16 %v247_v51, %v247_v51 }
 0x344   :  { %v1707_v53 = vpop.eup %1706 }
 0x345   :  { %1564 = vmatmul.mubr.msk.bf16.vlgmr.msra.gmra.mxu1 %vm131_vm2, %v249_v52  ;;  %v248_v55 = vmul.f32 %v1707_v53, %v1703_v45 }
 0x346   :  { %1574 = vmatpush3.bf16.xpose.msra.mxu1 %v368_v54  ;;  %1575 = vmatprep.mubr.msk.bf16.mxu1 %vm1745_vm0, %v1744_v0 }
 0x347   :  { %v250_v57 = vpack.c.bf16 %v248_v55, %v248_v55  ;;  %1585 = vmatprep.subr.bf16.mxu1 %v1744_v0 }
 0x349   :  { %1570 = vmatmul.mubr.msk.bf16.vlgmr.msra.gmra.mxu0 %vm131_vm2, %v250_v57 }
 0x34a   :  { %1580 = vmatpush3.bf16.xpose.msra.mxu0 %v419_v58  ;;  %1581 = vmatprep.mubr.msk.bf16.mxu0 %vm1745_vm0, %v1744_v0 }
 0x34b   :  { %1591 = vmatprep.subr.bf16.mxu0 %v1744_v0 }
 0x34d   :  { %1576 = vmatmul.mubr.msk.bf16.vlgmr.msra.gmra.mxu1 %vm131_vm2, %v361_v59 }
 0x34e   :  { %1587 = vmatprep.mubr.msk.bf16.mxu1 %vm1745_vm0, %v1744_v0 }
 0x351   :  { %1582 = vmatmul.mubr.msk.bf16.vlgmr.msra.gmra.mxu0 %vm131_vm2, %v412_v60 }
 0x352   :  { %1593 = vmatprep.mubr.msk.bf16.mxu0 %vm1745_vm0, %v1744_v0 }
 0x405   :  { %v294_v61 = vpop.f32.mrf.mxu1 }
 0x406   :  { %v1487_v62 = vpack.c.bf16 %v294_v61, %v294_v61 }
 0x407   :  { %v1565_v63 = vpop.f32.mrf.mxu1 }
 0x408   :  { %357 = vst.msk [vmem:[#allocation2] sm:$0xf] %vm356_vm4, %v1487_v62 }
 0x409   :  { %v297_v1 = vpop.f32.mrf.mxu1  ;;  %v342_v2 = vpop.f32.mrf.mxu0 }
 0x40a   :  { %v1488_v5 = vpack.c.bf16 %v342_v2, %v342_v2 }
 0x40b   :  { %v1566_v6 = vpop.f32.mrf.mxu1  ;;  %v1571_v7 = vpop.f32.mrf.mxu0 }
 0x40c   :  { %358 = vst.msk [vmem:[#allocation2 + $0x4] sm:$0xf] %vm356_vm4, %v1488_v5 }
 0x40d   :  { %v345_v8 = vpop.f32.mrf.mxu0  ;;  %v404_v9 = vpop.f32.mrf.mxu1 }
 0x40e   :  { %v461_v11 = vsel %vm131_vm2, %v404_v9, -inf }
 0x40f   :  { %462 = vmax.xlane.f32.xlu1 %v461_v11  ;;  %v1572_v12 = vpop.f32.mrf.mxu0  ;;  %v1577_v13 = vpop.f32.mrf.mxu1 }
 0x411   :  { %v407_v15 = vpop.f32.mrf.mxu1  ;;  %v455_v16 = vpop.f32.mrf.mxu0 }
 0x412   :  { %v464_v17 = vsel %vm131_vm2, %v455_v16, -inf }
 0x413   :  { %v1578_v18 = vpop.f32.mrf.mxu1  ;;  %465 = vmax.xlane.f32.xlu0 %v464_v17  ;;  %v1583_v19 = vpop.f32.mrf.mxu0 }
 0x415   :  { %v458_v21 = vpop.f32.mrf.mxu0 }
 0x417   :  { %v1584_v23 = vpop.f32.mrf.mxu0 }
 0x420   :  { %485 = vrot.lane.b32.xlu1 %v1872_v10, %s1750_s29 }
 0x424   :  { %598 = vrot.lane.b32.xlu1 %v1872_v10, %s1751_s30 }
 0x429   :  { %533 = vrot.lane.b32.xlu0 %v1875_v14, %s1750_s29 }
 0x42d   :  { %596 = vrot.lane.b32.xlu0 %v1881_v20, %s1752_s16 }
 0x498   :  { %v463_v24 = vpop.xlane.xlu1 %462 }
 0x499   :  { %v467_v25 = vsub.f32 %v404_v9, %v463_v24 }
 0x49b   :  { %v469_v26 = vmul.f32 1.442695, %v467_v25 }
 0x49c   :  { %v486_v27 = vpop.permute.xlu1 %485  ;;  %v466_v28 = vpop.xlane.xlu0 %465 }
 0x49d   :  { %1708 = vpow2.f32 %v469_v26  ;;  %v491_v29 = vsel %vm256_vm3, %v486_v27, 0  ;;  %v468_v30 = vsub.f32 %v455_v16, %v466_v28 }
 0x49e   :  { %1586 = vmatpush3.bf16.msra.mxu1 %v491_v29 }
 0x49f   :  { %v471_v31 = vmul.f32 1.442695, %v468_v30  ;;  %1597 = vmatprep.subr.bf16.mxu1 %v1744_v0 }
 0x4a0   :  { %v534_v32 = vpop.permute.xlu0 %533  ;;  %v599_v38 = vpop.permute.xlu1 %598 }
 0x4a1   :  { %1710 = vpow2.f32 %v471_v31  ;;  %v539_v33 = vsel %vm256_vm3, %v534_v32, 0  ;;  %v604_v45 = vsel %vm131_vm2, %v599_v38, 0 }
 0x4a2   :  { %1592 = vmatpush3.bf16.msra.mxu0 %v539_v33 }
 0x4a3   :  { %1603 = vmatprep.subr.bf16.mxu0 %v1744_v0 }
 0x4a4   :  { %v597_v50 = vpop.permute.xlu0 %596 }
 0x4aa   :  { %v1709_v34 = vpop.eup %1708 }
 0x4ab   :  { %v473_v35 = vsel %vm131_vm2, %v1709_v34, 0.0 }
 0x4ac   :  { %474 = vadd.xlane.f32.xlu1 %v473_v35 }
 0x4ae   :  { %v1711_v36 = vpop.eup %1710 }
 0x4af   :  { %v476_v37 = vsel %vm131_vm2, %v1711_v36, 0.0 }
 0x4b0   :  { %477 = vadd.xlane.f32.xlu1 %v476_v37 }
 0x4c1   :  { %648 = vrot.lane.b32.xlu1 %v1875_v14, %s1751_s30 }
 0x4c5   :  { %646 = vrot.lane.b32.xlu1 %v1888_v22, %s1752_s16 }
 0x535   :  { %v475_v39 = vpop.xlane.xlu1 %474 }
 0x536   :  { %1712 = vrcp.f32 %v475_v39 }
 0x539   :  { %v478_v40 = vpop.xlane.xlu1 %477 }
 0x53a   :  { %1714 = vrcp.f32 %v478_v40 }
 0x53d   :  { %v649_v47 = vpop.permute.xlu1 %648 }
 0x53e   :  { %v654_v49 = vsel %vm131_vm2, %v649_v47, 0 }
 0x541   :  { %v647_v51 = vpop.permute.xlu1 %646 }
 0x543   :  { %v1713_v41 = vpop.eup %1712 }
 0x544   :  { %v481_v42 = vmul.f32 %v1713_v41, %v1709_v34 }
 0x546   :  { %v483_v43 = vpack.c.bf16 %v481_v42, %v481_v42 }
 0x547   :  { %v1715_v44 = vpop.eup %1714 }
 0x548   :  { %1588 = vmatmul.mubr.msk.bf16.vlgmr.msra.gmra.mxu1 %vm131_vm2, %v483_v43  ;;  %v482_v46 = vmul.f32 %v1715_v44, %v1711_v36 }
 0x549   :  { %1598 = vmatpush3.bf16.xpose.msra.mxu1 %v604_v45  ;;  %1599 = vmatprep.mubr.msk.bf16.mxu1 %vm1745_vm0, %v1744_v0 }
 0x54a   :  { %v484_v48 = vpack.c.bf16 %v482_v46, %v482_v46  ;;  %1609 = vmatprep.subr.bf16.mxu1 %v1744_v0 }
 0x54c   :  { %1594 = vmatmul.mubr.msk.bf16.vlgmr.msra.gmra.mxu0 %vm131_vm2, %v484_v48 }
 0x54d   :  { %1604 = vmatpush3.bf16.xpose.msra.mxu0 %v654_v49  ;;  %1605 = vmatprep.mubr.msk.bf16.mxu0 %vm1745_vm0, %v1744_v0 }
 0x54e   :  { %1615 = vmatprep.subr.bf16.mxu0 %v1744_v0 }
 0x550   :  { %1600 = vmatmul.mubr.msk.bf16.vlgmr.msra.gmra.mxu1 %vm131_vm2, %v597_v50 }
 0x551   :  { %1611 = vmatprep.mubr.msk.bf16.mxu1 %vm1745_vm0, %v1744_v0 }
 0x554   :  { %1606 = vmatmul.mubr.msk.bf16.vlgmr.msra.gmra.mxu0 %vm131_vm2, %v647_v51 }
 0x555   :  { %1617 = vmatprep.mubr.msk.bf16.mxu0 %vm1745_vm0, %v1744_v0 }
 0x608   :  { %v1954_v52 = vpop.f32.mrf.mxu1 }
 0x60a   :  { %v1589_v53 = vpop.f32.mrf.mxu1 }
 0x60c   :  { %v530_v54 = vpop.f32.mrf.mxu1  ;;  %v1956_v55 = vpop.f32.mrf.mxu0 }
 0x60e   :  { %v1590_v56 = vpop.f32.mrf.mxu1  ;;  %v1595_v57 = vpop.f32.mrf.mxu0 }
 0x610   :  { %v578_v58 = vpop.f32.mrf.mxu0  ;;  %v640_v59 = vpop.f32.mrf.mxu1 }
 0x611   :  { %v696_v60 = vsel %vm131_vm2, %v640_v59, -inf }
 0x612   :  { %697 = vmax.xlane.f32.xlu0 %v696_v60  ;;  %v1596_v61 = vpop.f32.mrf.mxu0  ;;  %v1601_v62 = vpop.f32.mrf.mxu1  ;;  %v1490_v60 = vpack.c.bf16 %v1956_v55, %v1956_v55 }
 0x614   :  { %v643_v63 = vpop.f32.mrf.mxu1  ;;  %v690_v1 = vpop.f32.mrf.mxu0 }
 0x615   :  { %v699_v2 = vsel %vm131_vm2, %v690_v1, -inf }
 0x616   :  { %v1602_v5 = vpop.f32.mrf.mxu1  ;;  %700 = vmax.xlane.f32.xlu1 %v699_v2  ;;  %v1607_v6 = vpop.f32.mrf.mxu0 }
 0x618   :  { %v693_v7 = vpop.f32.mrf.mxu0 }
 0x61a   :  { %v1608_v8 = vpop.f32.mrf.mxu0 }
 0x627   :  { %720 = vrot.lane.b32.xlu1 %v1872_v10, %s1753_s17 }
 0x62b   :  { %833 = vrot.lane.b32.xlu1 %v1872_v10, %s1754_s18 }
 0x62f   :  { %883 = vrot.lane.b32.xlu1 %v1875_v14, %s1754_s18 }
 0x633   :  { %881 = vrot.lane.b32.xlu1 %v1888_v22, %s1755_s19 }
 0x69b   :  { %v698_v9 = vpop.xlane.xlu0 %697 }
 0x69c   :  { %v702_v11 = vsub.f32 %v640_v59, %v698_v9  ;;  %v1489_v59 = vpack.c.bf16 %v1954_v52, %v1954_v52 }
 0x69e   :  { %v704_v12 = vmul.f32 1.442695, %v702_v11 }
 0x69f   :  { %v701_v13 = vpop.xlane.xlu1 %700 }
 0x6a0   :  { %1716 = vpow2.f32 %v704_v12  ;;  %v703_v15 = vsub.f32 %v690_v1, %v701_v13 }
 0x6a2   :  { %v706_v16 = vmul.f32 1.442695, %v703_v15 }
 0x6a3   :  { %v721_v17 = vpop.permute.xlu1 %720 }
 0x6a4   :  { %1718 = vpow2.f32 %v706_v16  ;;  %v726_v18 = vsel %vm256_vm3, %v721_v17, 0 }
 0x6a5   :  { %1610 = vmatpush3.bf16.msra.mxu1 %v726_v18 }
 0x6a6   :  { %1621 = vmatprep.subr.bf16.mxu1 %v1744_v0 }
 0x6a7   :  { %v834_v29 = vpop.permute.xlu1 %833 }
 0x6a8   :  { %v839_v33 = vsel %vm131_vm2, %v834_v29, 0 }
 0x6ab   :  { %v884_v34 = vpop.permute.xlu1 %883 }
 0x6ac   :  { %v889_v36 = vsel %vm131_vm2, %v884_v34, 0 }
 0x6ad   :  { %v1717_v19 = vpop.eup %1716 }
 0x6ae   :  { %v708_v21 = vsel %vm131_vm2, %v1717_v19, 0.0 }
 0x6af   :  { %709 = vadd.xlane.f32.xlu0 %v708_v21  ;;  %v882_v38 = vpop.permute.xlu1 %881 }
 0x6b1   :  { %v1719_v23 = vpop.eup %1718 }
 0x6b2   :  { %v711_v22 = vsel %vm131_vm2, %v1719_v23, 0.0 }
 0x6b3   :  { %712 = vadd.xlane.f32.xlu0 %v711_v22 }
 0x6c9   :  { %768 = vrot.lane.b32.xlu0 %v1875_v14, %s1753_s17 }
 0x6cd   :  { %831 = vrot.lane.b32.xlu0 %v1881_v20, %s1755_s19 }
 0x738   :  { %v710_v24 = vpop.xlane.xlu0 %709 }
 0x739   :  { %1720 = vrcp.f32 %v710_v24 }
 0x73c   :  { %v713_v25 = vpop.xlane.xlu0 %712 }
 0x73d   :  { %1722 = vrcp.f32 %v713_v25 }
 0x740   :  { %v769_v26 = vpop.permute.xlu0 %768 }
 0x741   :  { %v774_v27 = vsel %vm256_vm3, %v769_v26, 0 }
 0x742   :  { %1616 = vmatpush3.bf16.msra.mxu0 %v774_v27  ;;  %v1691_v27 = vld [vmem:[%s2098_s3 + $0x8] sm:$0xff]  }
 0x743   :  { %1627 = vmatprep.subr.bf16.mxu0 %v1744_v0 }
 0x744   :  { %v832_v37 = vpop.permute.xlu0 %831 }
 0x746   :  { %v1721_v28 = vpop.eup %1720 }
 0x747   :  { %v716_v30 = vmul.f32 %v1721_v28, %v1717_v19  ;;  %v1692_v28 = vld [vmem:[%s2098_s3] sm:$0xff]  }
 0x749   :  { %v718_v31 = vpack.c.bf16 %v716_v30, %v716_v30 }
 0x74a   :  { %v1723_v32 = vpop.eup %1722 }
 0x74b   :  { %1612 = vmatmul.mubr.msk.bf16.vlgmr.msra.gmra.mxu1 %vm131_vm2, %v718_v31  ;;  %v717_v20 = vmul.f32 %v1723_v32, %v1719_v23 }
 0x74c   :  { %1622 = vmatpush3.bf16.xpose.msra.mxu1 %v839_v33  ;;  %1623 = vmatprep.mubr.msk.bf16.mxu1 %vm1745_vm0, %v1744_v0 }
 0x74d   :  { %v719_v35 = vpack.c.bf16 %v717_v20, %v717_v20  ;;  %1633 = vmatprep.subr.bf16.mxu1 %v1744_v0 }
 0x74f   :  { %1618 = vmatmul.mubr.msk.bf16.vlgmr.msra.gmra.mxu0 %vm131_vm2, %v719_v35 }
 0x750   :  { %1628 = vmatpush3.bf16.xpose.msra.mxu0 %v889_v36  ;;  %1629 = vmatprep.mubr.msk.bf16.mxu0 %vm1745_vm0, %v1744_v0 }
 0x751   :  { %1639 = vmatprep.subr.bf16.mxu0 %v1744_v0 }
 0x753   :  { %1624 = vmatmul.mubr.msk.bf16.vlgmr.msra.gmra.mxu1 %vm131_vm2, %v832_v37 }
 0x754   :  { %1635 = vmatprep.mubr.msk.bf16.mxu1 %vm1745_vm0, %v1744_v0 }
 0x757   :  { %1630 = vmatmul.mubr.msk.bf16.vlgmr.msra.gmra.mxu0 %vm131_vm2, %v882_v38 }
 0x758   :  { %1641 = vmatprep.mubr.msk.bf16.mxu0 %vm1745_vm0, %v1744_v0 }
 0x80b   :  { %v762_v39 = vpop.f32.mrf.mxu1 }
 0x80c   :  { %v1491_v15 = vpack.c.bf16 %v762_v39, %v762_v39 }
 0x80d   :  { %v1613_v40 = vpop.f32.mrf.mxu1 }
 0x80f   :  { %v765_v41 = vpop.f32.mrf.mxu1  ;;  %v810_v42 = vpop.f32.mrf.mxu0 }
 0x810   :  { %v1492_v61 = vpack.c.bf16 %v810_v42, %v810_v42  ;;  %v1466_v41 = vld [vmem:[%s2099_s4] ss:$0 sm:$0xff] }
 0x811   :  { %v1614_v43 = vpop.f32.mrf.mxu1  ;;  %v1619_v44 = vpop.f32.mrf.mxu0 }
 0x813   :  { %v813_v45 = vpop.f32.mrf.mxu0  ;;  %v875_v46 = vpop.f32.mrf.mxu1 }
 0x814   :  { %v931_v47 = vsel %vm131_vm2, %v875_v46, -inf }
 0x815   :  { %932 = vmax.xlane.f32.xlu0 %v931_v47  ;;  %v1620_v48 = vpop.f32.mrf.mxu0  ;;  %v1625_v49 = vpop.f32.mrf.mxu1 }
 0x817   :  { %v878_v50 = vpop.f32.mrf.mxu1  ;;  %v925_v51 = vpop.f32.mrf.mxu0 }
 0x818   :  { %v934_v53 = vsel %vm131_vm2, %v925_v51, -inf }
 0x819   :  { %v1626_v54 = vpop.f32.mrf.mxu1  ;;  %935 = vmax.xlane.f32.xlu1 %v934_v53  ;;  %v1631_v56 = vpop.f32.mrf.mxu0 }
 0x81b   :  { %v928_v57 = vpop.f32.mrf.mxu0 }
 0x81d   :  { %v1632_v58 = vpop.f32.mrf.mxu0 }
 0x82a   :  { %955 = vrot.lane.b32.xlu1 %v1872_v10, %s1756_s20 }
 0x82e   :  { %587 = vrot.lane.b32.xlu1 %v1489_v59, %s1757_s21 }
 0x832   :  { %589 = vrot.lane.b32.xlu1 %v1490_v60, %s1757_s21 }
 0x836   :  { %824 = vrot.lane.b32.xlu1 %v1492_v61, %s1758_s22 }
 0x89e   :  { %v933_v62 = vpop.xlane.xlu0 %932 }
 0x89f   :  { %v937_v63 = vsub.f32 %v875_v46, %v933_v62 }
 0x8a1   :  { %v939_v1 = vmul.f32 1.442695, %v937_v63  ;;  %v1695_v63 = vld [vmem:[%s2100_s5] sm:$0xff]  }
 0x8a2   :  { %v936_v2 = vpop.xlane.xlu1 %935 }
 0x8a3   :  { %1724 = vpow2.f32 %v939_v1  ;;  %v938_v5 = vsub.f32 %v925_v51, %v936_v2  ;;  %v1696_v1 = vld [vmem:[%s2101_s7 + $0x18] sm:$0xff]  }
 0x8a5   :  { %v941_v6 = vmul.f32 1.442695, %v938_v5 }
 0x8a6   :  { %v956_v10 = vpop.permute.xlu1 %955 }
 0x8a7   :  { %1726 = vpow2.f32 %v941_v6  ;;  %v961_v52 = vsel %vm256_vm3, %v956_v10, 0 }
 0x8a8   :  { %1634 = vmatpush3.bf16.msra.mxu1 %v961_v52 }
 0x8a9   :  { %1645 = vmatprep.subr.bf16.mxu1 %v1744_v0 }
 0x8aa   :  { %v588_v55 = vpop.permute.xlu1 %587 }
 0x8ab   :  { %594 = vst.msk [vmem:[#allocation2] sm:$0xf] %vm593_vm5, %v588_v55 }
 0x8ae   :  { %v590_v7 = vpop.permute.xlu1 %589 }
 0x8af   :  { %595 = vst.msk [vmem:[#allocation2 + $0x4] sm:$0xf] %vm593_vm5, %v590_v7 }
 0x8b0   :  { %v1725_v8 = vpop.eup %1724 }
 0x8b1   :  { %v943_v9 = vsel %vm131_vm2, %v1725_v8, 0.0 }
 0x8b2   :  { %944 = vadd.xlane.f32.xlu0 %v943_v9  ;;  %v825_v11 = vpop.permute.xlu1 %824  ;;  %v1471_v9 = vld [vmem:[%s2102_s9] ss:$0 sm:$0xff] }
 0x8b3   :  { %830 = vst.msk [vmem:[#allocation2 + $0x4] sm:$0xf] %vm828_vm6, %v825_v11 }
 0x8b4   :  { %v1727_v12 = vpop.eup %1726 }
 0x8b5   :  { %v946_v13 = vsel %vm131_vm2, %v1727_v12, 0.0 }
 0x8b6   :  { %947 = vadd.xlane.f32.xlu0 %v946_v13 }
 0x8cc   :  { %1003 = vrot.lane.b32.xlu0 %v1875_v14, %s1756_s20 }
 0x8d0   :  { %822 = vrot.lane.b32.xlu0 %v1491_v15, %s1758_s22  ;;  %v1472_v15 = vld [vmem:[%s2103_s10] ss:$0 sm:$0xff] }
 0x93b   :  { %v945_v16 = vpop.xlane.xlu0 %944 }
 0x93c   :  { %1728 = vrcp.f32 %v945_v16 }
 0x93f   :  { %v948_v17 = vpop.xlane.xlu0 %947 }
 0x940   :  { %1730 = vrcp.f32 %v948_v17 }
 0x943   :  { %v1004_v18 = vpop.permute.xlu0 %1003 }
 0x944   :  { %v1009_v19 = vsel %vm256_vm3, %v1004_v18, 0 }
 0x945   :  { %1640 = vmatpush3.bf16.msra.mxu0 %v1009_v19 }
 0x946   :  { %1653 = vmatprep.subr.bf16.mxu0 %v1744_v0 }
 0x947   :  { %v823_v21 = vpop.permute.xlu0 %822 }
 0x948   :  { %829 = vst.msk [vmem:[#allocation2] sm:$0xf] %vm828_vm6, %v823_v21  ;;  %v1697_v21 = vld [vmem:[%s2101_s7 + $0x10] sm:$0xff]  }
 0x949   :  { %v1729_v23 = vpop.eup %1728 }
 0x94a   :  { %v951_v22 = vmul.f32 %v1729_v23, %v1725_v8  ;;  %v1698_v23 = vld [vmem:[%s2101_s7 + $0x8] sm:$0xff]  }
 0x94c   :  { %v953_v24 = vpack.c.bf16 %v951_v22, %v951_v22  ;;  %v1699_v22 = vld [vmem:[%s2101_s7] sm:$0xff]  }
 0x94d   :  { %v1731_v25 = vpop.eup %1730 }
 0x94e   :  { %1636 = vmatmul.mubr.msk.bf16.vlgmr.msra.gmra.mxu1 %vm131_vm2, %v953_v24  ;;  %v952_v14 = vmul.f32 %v1731_v25, %v1727_v12  ;;  %v1473_v24 = vld [vmem:[%s2104_s6] ss:$0 sm:$0xff] }
 0x94f   :  { %1649 = vmatprep.mubr.msk.bf16.mxu1 %vm1745_vm0, %v1744_v0  ;;  %1646 = vmatpush3.bf16.msra.mxu1 %v1691_v27 }
 0x950   :  { %v954_v26 = vpack.c.bf16 %v952_v14, %v952_v14  ;;  %1647 = vmatprep.subr.bf16.mxu1 %v1744_v0 }
 0x952   :  { %1642 = vmatmul.mubr.msk.bf16.vlgmr.msra.gmra.mxu0 %vm131_vm2, %v954_v26 }
 0x953   :  { %1657 = vmatprep.mubr.msk.bf16.mxu0 %vm1745_vm0, %v1744_v0  ;;  %1648 = vmatpush3.bf16.msra.mxu1 %v1692_v28 }
 0x954   :  { %1661 = vmatprep.subr.bf16.mxu1 %v1744_v0 }
 0xa0e   :  { %v997_v29 = vpop.f32.mrf.mxu1 }
 0xa0f   :  { %v1493_v30 = vpack.c.bf16 %v997_v29, %v997_v29 }
 0xa10   :  { %v1637_v31 = vpop.f32.mrf.mxu1 }
 0xa11   :  { %1057 = vrot.lane.b32.xlu0 %v1493_v30, %s1759_s26 }
 0xa12   :  { %v1000_v32 = vpop.f32.mrf.mxu1  ;;  %v1045_v33 = vpop.f32.mrf.mxu0 }
 0xa13   :  { %v1494_v20 = vpack.c.bf16 %v1045_v33, %v1045_v33 }
 0xa14   :  { %v1638_v34 = vpop.f32.mrf.mxu1  ;;  %v1643_v35 = vpop.f32.mrf.mxu0 }
 0xa15   :  { %1059 = vrot.lane.b32.xlu1 %v1494_v20, %s1759_s26 }
 0xa16   :  { %v1048_v36 = vpop.f32.mrf.mxu0 }
 0xa18   :  { %v1644_v37 = vpop.f32.mrf.mxu0 }
 0xa83   :  { %v1058_v38 = vpop.permute.xlu0 %1057 }
 0xa84   :  { %1064 = vst.msk [vmem:[#allocation2] sm:$0xf] %vm1063_vm7, %v1058_v38 }
 0xa87   :  { %v1060_v39 = vpop.permute.xlu1 %1059 }
 0xa88   :  { %1065 = vst.msk [vmem:[#allocation2 + $0x4] sm:$0xf] %vm1063_vm7, %v1060_v39 }
 0xa8f   :  { %v1693_v40 = vld [vmem:[#allocation2] sm:$0xff]  }
 0xa90   :  { %1650 = vmatmul.mubr.msk.bf16.vlgmr.msra.gmra.mxu1 %vm77_vm1, %v1693_v40 }
 0xa91   :  { %1669 = vmatprep.mubr.msk.bf16.mxu1 %vm1745_vm0, %v1744_v0  ;;  %1662 = vmatpush3.bf16.msra.mxu1 %v1696_v1 }
 0xa92   :  { %1663 = vmatprep.subr.bf16.mxu1 %v1744_v0 }
 0xa95   :  { %1664 = vmatpush3.bf16.msra.mxu1 %v1697_v21 }
 0xa96   :  { %1665 = vmatprep.subr.bf16.mxu1 %v1744_v0 }
 0xa99   :  { %1666 = vmatpush3.bf16.msra.mxu1 %v1698_v23 }
 0xa9a   :  { %1667 = vmatprep.subr.bf16.mxu1 %v1744_v0 }
 0xa9d   :  { %1668 = vmatpush3.bf16.msra.mxu1 %v1699_v22 }
 0xb50   :  { %v1133_v42 = vpop.f32.mrf.mxu1 }
 0xb51   :  { %v1134_v43 = vadd.f32 %v1466_v41, %v1133_v42 }
 0xb52   :  { %v1651_v44 = vpop.f32.mrf.mxu1 }
 0xb53   :  { %v1140_v45 = vadd.f32 %v1134_v43, %v1855_v3 }
 0xb54   :  { %v1136_v46 = vpop.f32.mrf.mxu1 }
 0xb55   :  { %v1137_v47 = vadd.f32 %v1466_v41, %v1136_v46  ;;  %v1144_v48 = vsel %vm77_vm1, %v1140_v45, 0.0 }
 0xb56   :  { %1145 = vadd.xlane.f32.xlu0 %v1144_v48  ;;  %v1652_v49 = vpop.f32.mrf.mxu1 }
 0xb57   :  { %v1141_v50 = vadd.f32 %v1137_v47, %v1860_v4  ;;  %v1694_v4 = vld [vmem:[%s2100_s5 + $0x8] sm:$0xff]  }
 0xb58   :  { %1654 = vmatpush3.bf16.msra.mxu0 %v1694_v4 }
 0xb59   :  { %v1147_v51 = vsel %vm77_vm1, %v1141_v50, 0.0  ;;  %1655 = vmatprep.subr.bf16.mxu0 %v1744_v0  ;;  %v1477_v0 = vld [vmem:[%s2105_s8] ss:$0 sm:$0xff] }
 0xb5a   :  { %1148 = vadd.xlane.f32.xlu1 %v1147_v51 }
 0xb5c   :  { %1656 = vmatpush3.bf16.msra.mxu0 %v1695_v63 }
 0xbdf   :  { %v1146_v53 = vpop.xlane.xlu0 %1145 }
 0xbe0   :  { %v1151_v54 = vmul.f32 0.03125, %v1146_v53 }
 0xbe2   :  { %v1153_v56 = vsub.f32 %v1140_v45, %v1151_v54 }
 0xbe3   :  { %v1149_v57 = vpop.xlane.xlu1 %1148 }
 0xbe4   :  { %v1152_v58 = vmul.f32 0.03125, %v1149_v57  ;;  %v1155_v59 = vmul.f32 %v1153_v56, %v1153_v56 }
 0xbe6   :  { %v1154_v60 = vsub.f32 %v1141_v50, %v1152_v58  ;;  %v1157_v3 = vsel %vm77_vm1, %v1155_v59, 0.0 }
 0xbe7   :  { %1158 = vadd.xlane.f32.xlu0 %v1157_v3  ;;  %v1483_v3 = vld [vmem:[%s2106_s11] ss:$0 sm:$0xff] }
 0xbe8   :  { %v1156_v61 = vmul.f32 %v1154_v60, %v1154_v60 }
 0xbea   :  { %v1160_v62 = vsel %vm77_vm1, %v1156_v61, 0.0 }
 0xbeb   :  { %1161 = vadd.xlane.f32.xlu0 %v1160_v62  ;;  %v1484_v62 = vld [vmem:[%s2107_s12] ss:$0 sm:$0xff] }
 0xc70   :  { %v1159_v2 = vpop.xlane.xlu0 %1158 }
 0xc71   :  { %v1163_v5 = vmul.f32 0.03125, %v1159_v2 }
 0xc73   :  { %v1165_v6 = vadd.f32 1e-05, %v1163_v5 }
 0xc74   :  { %v1162_v10 = vpop.xlane.xlu0 %1161 }
 0xc75   :  { %1732 = vrsqrt.f32 %v1165_v6  ;;  %v1164_v52 = vmul.f32 0.03125, %v1162_v10 }
 0xc77   :  { %v1166_v55 = vadd.f32 1e-05, %v1164_v52 }
 0xc79   :  { %1734 = vrsqrt.f32 %v1166_v55 }
 0xc82   :  { %v1733_v7 = vpop.eup %1732 }
 0xc83   :  { %v1169_v8 = vmul.f32 %v1733_v7, %v1153_v56 }
 0xc85   :  { %v1177_v13 = vmul.f32 %v1471_v9, %v1169_v8 }
 0xc86   :  { %v1735_v11 = vpop.eup %1734 }
 0xc87   :  { %v1170_v12 = vmul.f32 %v1735_v11, %v1154_v60  ;;  %v1185_v17 = vadd.f32 %v1472_v15, %v1177_v13 }
 0xc89   :  { %v1178_v16 = vmul.f32 %v1471_v9, %v1170_v12 }
 0xc8b   :  { %v1186_v18 = vadd.f32 %v1472_v15, %v1178_v16 }
 0xc8d   :  { %v1187_v19 = vpack.c.bf16 %v1186_v18, %v1185_v17 }
 0xc8f   :  { %1658 = vmatmul.mubr.msk.bf16.vlgmr.msra.gmra.mxu0 %vm77_vm1, %v1187_v19 }
 0xd4f   :  { %v1248_v25 = vpop.f32.mrf.mxu0 }
 0xd50   :  { %v1249_v26 = vadd.f32 %v1473_v24, %v1248_v25 }
 0xd51   :  { %v1659_v14 = vpop.f32.mrf.mxu0 }
 0xd52   :  { %v1255_v30 = vmax.f32 %v1249_v26, 0.0  ;;  %v1485_v14 = vld [vmem:[%s2108_s13] ss:$0 sm:$0xff] }
 0xd53   :  { %v1251_v27 = vpop.f32.mrf.mxu0 }
 0xd54   :  { %v1252_v28 = vadd.f32 %v1473_v24, %v1251_v27  ;;  %v1486_v27 = vld [vmem:[%s2109_s14] ss:$0 sm:$0xff] }
 0xd55   :  { %v1660_v29 = vpop.f32.mrf.mxu0 }
 0xd56   :  { %v1256_v31 = vmax.f32 %v1252_v28, 0.0 }
 0xd58   :  { %v1257_v32 = vpack.c.bf16 %v1256_v31, %v1255_v30 }
 0xd5a   :  { %1670 = vmatmul.mubr.msk.bf16.vlgmr.msra.gmra.mxu1 %vm1297_vm8, %v1257_v32 }
 0xe1a   :  { %v1335_v33 = vpop.f32.mrf.mxu1 }
 0xe1b   :  { %v1336_v20 = vadd.f32 %v1477_v0, %v1335_v33 }
 0xe1c   :  { %v1671_v34 = vpop.f32.mrf.mxu1 }
 0xe1d   :  { %v1342_v35 = vadd.f32 %v1336_v20, %v1185_v17 }
 0xe1e   :  { %v1338_v36 = vpop.f32.mrf.mxu1 }
 0xe1f   :  { %v1339_v37 = vadd.f32 %v1477_v0, %v1338_v36  ;;  %v1346_v38 = vsel %vm77_vm1, %v1342_v35, 0.0 }
 0xe20   :  { %1347 = vadd.xlane.f32.xlu1 %v1346_v38  ;;  %v1672_v39 = vpop.f32.mrf.mxu1 }
 0xe21   :  { %v1343_v40 = vadd.f32 %v1339_v37, %v1186_v18 }
 0xe23   :  { %v1349_v41 = vsel %vm77_vm1, %v1343_v40, 0.0 }
 0xe24   :  { %1350 = vadd.xlane.f32.xlu0 %v1349_v41 }
 0xea9   :  { %v1348_v42 = vpop.xlane.xlu1 %1347 }
 0xeaa   :  { %v1352_v43 = vmul.f32 0.03125, %v1348_v42 }
 0xeac   :  { %v1354_v44 = vsub.f32 %v1342_v35, %v1352_v43 }
 0xead   :  { %v1351_v45 = vpop.xlane.xlu0 %1350 }
 0xeae   :  { %v1353_v46 = vmul.f32 0.03125, %v1351_v45  ;;  %v1356_v47 = vmul.f32 %v1354_v44, %v1354_v44 }
 0xeb0   :  { %v1355_v48 = vsub.f32 %v1343_v40, %v1353_v46  ;;  %v1358_v49 = vsel %vm77_vm1, %v1356_v47, 0.0 }
 0xeb1   :  { %1359 = vadd.xlane.f32.xlu1 %v1358_v49 }
 0xeb2   :  { %v1357_v50 = vmul.f32 %v1355_v48, %v1355_v48 }
 0xeb4   :  { %v1361_v51 = vsel %vm77_vm1, %v1357_v50, 0.0 }
 0xeb5   :  { %1362 = vadd.xlane.f32.xlu0 %v1361_v51 }
 0xf3a   :  { %v1360_v53 = vpop.xlane.xlu1 %1359 }
 0xf3b   :  { %v1364_v54 = vmul.f32 0.03125, %v1360_v53 }
 0xf3d   :  { %v1366_v56 = vadd.f32 1e-05, %v1364_v54 }
 0xf3e   :  { %v1363_v57 = vpop.xlane.xlu0 %1362 }
 0xf3f   :  { %1736 = vrsqrt.f32 %v1366_v56  ;;  %v1365_v58 = vmul.f32 0.03125, %v1363_v57 }
 0xf41   :  { %v1367_v59 = vadd.f32 1e-05, %v1365_v58 }
 0xf43   :  { %1738 = vrsqrt.f32 %v1367_v59 }
 0xf4c   :  { %v1737_v60 = vpop.eup %1736 }
 0xf4d   :  { %v1370_v61 = vmul.f32 %v1737_v60, %v1354_v44 }
 0xf4f   :  { %v1378_v4 = vmul.f32 %v1483_v3, %v1370_v61 }
 0xf50   :  { %v1739_v63 = vpop.eup %1738 }
 0xf51   :  { %v1386_v1 = vadd.f32 %v1484_v62, %v1378_v4  ;;  %v1371_v2 = vmul.f32 %v1739_v63, %v1355_v48 }
 0xf53   :  { %v1390_v5 = vsel %vm77_vm1, %v1386_v1, 0.0  ;;  %v1379_v6 = vmul.f32 %v1483_v3, %v1371_v2 }
 0xf54   :  { %1391 = vadd.xlane.f32.xlu1 %v1390_v5 }
 0xf55   :  { %v1387_v10 = vadd.f32 %v1484_v62, %v1379_v6 }
 0xf57   :  { %v1393_v52 = vsel %vm77_vm1, %v1387_v10, 0.0 }
 0xf58   :  { %1394 = vadd.xlane.f32.xlu0 %v1393_v52 }
 0xfdd   :  { %v1392_v55 = vpop.xlane.xlu1 %1391 }
 0xfde   :  { %v1396_v7 = vmul.f32 0.03125, %v1392_v55 }
 0xfe0   :  { %v1398_v8 = vsub.f32 %v1386_v1, %v1396_v7 }
 0xfe1   :  { %v1395_v9 = vpop.xlane.xlu0 %1394 }
 0xfe2   :  { %v1397_v11 = vmul.f32 0.03125, %v1395_v9  ;;  %v1400_v12 = vmul.f32 %v1398_v8, %v1398_v8 }
 0xfe4   :  { %v1399_v13 = vsub.f32 %v1387_v10, %v1397_v11  ;;  %v1402_v15 = vsel %vm77_vm1, %v1400_v12, 0.0 }
 0xfe5   :  { %1403 = vadd.xlane.f32.xlu1 %v1402_v15 }
 0xfe6   :  { %v1401_v16 = vmul.f32 %v1399_v13, %v1399_v13 }
 0xfe8   :  { %v1405_v17 = vsel %vm77_vm1, %v1401_v16, 0.0 }
 0xfe9   :  { %1406 = vadd.xlane.f32.xlu0 %v1405_v17 }
0x106e   :  { %v1404_v18 = vpop.xlane.xlu1 %1403 }
0x106f   :  { %v1408_v19 = vmul.f32 0.03125, %v1404_v18 }
0x1071   :  { %v1410_v21 = vadd.f32 1e-05, %v1408_v19 }
0x1072   :  { %v1407_v23 = vpop.xlane.xlu0 %1406 }
0x1073   :  { %1740 = vrsqrt.f32 %v1410_v21  ;;  %v1409_v22 = vmul.f32 0.03125, %v1407_v23 }
0x1075   :  { %v1411_v24 = vadd.f32 1e-05, %v1409_v22 }
0x1077   :  { %1742 = vrsqrt.f32 %v1411_v24 }
0x1080   :  { %v1741_v25 = vpop.eup %1740 }
0x1081   :  { %v1414_v26 = vmul.f32 %v1741_v25, %v1398_v8 }
0x1083   :  { %v1422_v28 = vmul.f32 %v1485_v14, %v1414_v26 }
0x1084   :  { %v1743_v29 = vpop.eup %1742 }
0x1085   :  { %v1430_v30 = vadd.f32 %v1486_v27, %v1422_v28  ;;  %v1415_v31 = vmul.f32 %v1743_v29, %v1399_v13 }
0x1087   :  { %1432 = vst.msk [vmem:[%s2110_s15] sm:$0xff] %vm77_vm1, %v1430_v30  ;;  %v1423_v32 = vmul.f32 %v1485_v14, %v1415_v31 }
0x1089   :  { %v1431_v0 = vadd.f32 %v1486_v27, %v1423_v32 }
0x108b   :  { %1433 = vst.msk [vmem:[%s2110_s15 + $0x8] sm:$0xff] %vm77_vm1, %v1431_v0 }

</bundles_post_ra>
